<compile_context>
chip_gen: v6e
topology: v6e:2x2x1
jax: 0.10.0
libtpu: 0.0.40
codegen_flags: <defaults>
</compile_context>

<pallas_src>
import functools
import math

import jax
import jax.numpy as jnp
from jax.experimental import pallas as pl
from jax.experimental.pallas import tpu as pltpu


def _round_up(x, m):
    return (x + m - 1) // m * m


def _pick_tile(d, cap=1536):
    """Pick a lane-dim tile (multiple of 128) with small padding waste."""
    if d <= cap:
        return _round_up(d, 128)
    best = None
    for t in (1536, 1408, 1280, 1152, 1024, 896, 768, 640, 512):
        pad = _round_up(d, t) - d
        if best is None or pad < best[1]:
            best = (t, pad)
    return best[0]


def _pick_tiles(M, K, N, has_res):
    """Choose (tm, tk, tn) so double-buffered blocks fit a ~20 MiB VMEM budget."""
    tk = _pick_tile(K)
    tn = _pick_tile(N)
    budget = 20 * 1024 * 1024
    tm = min(1024, _round_up(M, 16))
    while True:
        a_b = 2 * tm * tk * 2          # bf16 A, double-buffered
        b_b = 2 * tk * tn * 2          # bf16 B, double-buffered
        o_b = 2 * tm * tn * 4          # f32 output, double-buffered
        acc = tm * tn * 4              # f32 accumulator scratch
        r_b = (2 * tm * tn * 4) if has_res else 0
        if a_b + b_b + o_b + acc + r_b <= budget or tm <= 16:
            break
        tm = max(16, _round_up(tm // 2, 16))
    return tm, tk, tn


# ----------------------------------------------------------------------------
# Pallas kernel 1: batched tiled matmul (bf16 MXU, f32 acc) with fused
#                  per-column scale/bias (+ optional residual) + activation.
# ----------------------------------------------------------------------------
def _apply_act(y, act):
    if act == "relu":
        return jnp.maximum(y, 0.0)
    if act == "sigmoid":
        return jax.nn.sigmoid(y)
    return y


def _mm_kernel(a_ref, b_ref, s_ref, t_ref, o_ref, acc_ref, *, act):
    @pl.when(pl.program_id(3) == 0)
    def _():
        acc_ref[...] = jnp.zeros_like(acc_ref)

    acc_ref[...] += jnp.dot(a_ref[0], b_ref[0],
                            preferred_element_type=jnp.float32)

    @pl.when(pl.program_id(3) == pl.num_programs(3) - 1)
    def _():
        y = acc_ref[...] * s_ref[...] + t_ref[...]
        o_ref[0] = _apply_act(y, act).astype(o_ref.dtype)


def _mm_res_kernel(a_ref, b_ref, s_ref, t_ref, r_ref, o_ref, acc_ref, *, act):
    @pl.when(pl.program_id(3) == 0)
    def _():
        acc_ref[...] = jnp.zeros_like(acc_ref)

    acc_ref[...] += jnp.dot(a_ref[0], b_ref[0],
                            preferred_element_type=jnp.float32)

    @pl.when(pl.program_id(3) == pl.num_programs(3) - 1)
    def _():
        y = acc_ref[...] * s_ref[...] + t_ref[...] + r_ref[0]
        o_ref[0] = _apply_act(y, act).astype(o_ref.dtype)


@functools.partial(jax.jit, static_argnames=("act", "tm", "tn", "tk"))
def _mm_fused(a, b, s, t, *, act, tm, tn, tk):
    B, Mp, Kp = a.shape
    Np = b.shape[2]
    grid = (B, Mp // tm, Np // tn, Kp // tk)
    return pl.pallas_call(
        functools.partial(_mm_kernel, act=act),
        out_shape=jax.ShapeDtypeStruct((B, Mp, Np), jnp.float32),
        grid_spec=pltpu.PrefetchScalarGridSpec(
            num_scalar_prefetch=0,
            grid=grid,
            in_specs=[
                pl.BlockSpec((1, tm, tk), lambda bb, i, j, k: (bb, i, k)),
                pl.BlockSpec((1, tk, tn), lambda bb, i, j, k: (bb, k, j)),
                pl.BlockSpec((1, tn), lambda bb, i, j, k: (0, j)),
                pl.BlockSpec((1, tn), lambda bb, i, j, k: (0, j)),
            ],
            out_specs=pl.BlockSpec((1, tm, tn), lambda bb, i, j, k: (bb, i, j)),
            scratch_shapes=[pltpu.VMEM((tm, tn), jnp.float32)],
        ),
        compiler_params=pltpu.CompilerParams(
            dimension_semantics=("parallel", "parallel", "parallel", "arbitrary")),
    )(a, b, s, t)


@functools.partial(jax.jit, static_argnames=("act", "tm", "tn", "tk"))
def _mm_fused_res(a, b, s, t, r, *, act, tm, tn, tk):
    B, Mp, Kp = a.shape
    Np = b.shape[2]
    grid = (B, Mp // tm, Np // tn, Kp // tk)
    return pl.pallas_call(
        functools.partial(_mm_res_kernel, act=act),
        out_shape=jax.ShapeDtypeStruct((B, Mp, Np), jnp.float32),
        grid_spec=pltpu.PrefetchScalarGridSpec(
            num_scalar_prefetch=0,
            grid=grid,
            in_specs=[
                pl.BlockSpec((1, tm, tk), lambda bb, i, j, k: (bb, i, k)),
                pl.BlockSpec((1, tk, tn), lambda bb, i, j, k: (bb, k, j)),
                pl.BlockSpec((1, tn), lambda bb, i, j, k: (0, j)),
                pl.BlockSpec((1, tn), lambda bb, i, j, k: (0, j)),
                pl.BlockSpec((1, tm, tn), lambda bb, i, j, k: (bb, i, j)),
            ],
            out_specs=pl.BlockSpec((1, tm, tn), lambda bb, i, j, k: (bb, i, j)),
            scratch_shapes=[pltpu.VMEM((tm, tn), jnp.float32)],
        ),
        compiler_params=pltpu.CompilerParams(
            dimension_semantics=("parallel", "parallel", "parallel", "arbitrary")),
    )(a, b, s, t, r)


def fused_bmm(a, b, scale=None, bias=None, act="none", residual=None):
    """(B,M,K)@(B,K,N) -> act((A@B)*scale + bias [+ residual]); scale/bias per N."""
    B, M, K = a.shape
    Bb, Kb, N = b.shape
    assert B == Bb and K == Kb
    tm, tk, tn = _pick_tiles(M, K, N, residual is not None)
    Mp, Kp, Np = _round_up(M, tm), _round_up(K, tk), _round_up(N, tn)

    ap = jnp.pad(a.astype(jnp.bfloat16), ((0, 0), (0, Mp - M), (0, Kp - K)))
    bp = jnp.pad(b.astype(jnp.bfloat16), ((0, 0), (0, Kp - K), (0, Np - N)))
    s = jnp.ones((N,), jnp.float32) if scale is None else scale.astype(jnp.float32)
    t = jnp.zeros((N,), jnp.float32) if bias is None else bias.astype(jnp.float32)
    sp = jnp.pad(s, (0, Np - N))[None]
    tp = jnp.pad(t, (0, Np - N))[None]

    if residual is None:
        out = _mm_fused(ap, bp, sp, tp, act=act, tm=tm, tn=tn, tk=tk)
    else:
        rp = jnp.pad(residual.astype(jnp.float32),
                     ((0, 0), (0, Mp - M), (0, Np - N)))
        out = _mm_fused_res(ap, bp, sp, tp, rp, act=act, tm=tm, tn=tn, tk=tk)
    return out[:, :M, :N]


def fused_matmul(a, b, scale=None, bias=None, act="none", residual=None):
    r = None if residual is None else residual[None]
    return fused_bmm(a[None], b[None], scale, bias, act, r)[0]


def fused_linear(x, w, b=None, act="none"):
    """w torch-layout (out, in)."""
    sh = x.shape
    y = fused_matmul(x.reshape(-1, sh[-1]), jnp.transpose(w), bias=b, act=act)
    return y.reshape(sh[:-1] + (w.shape[0],))


# ----------------------------------------------------------------------------
# Pallas kernel 2: per-(batch, channel) scaling  (SE excitation)
# ----------------------------------------------------------------------------
def _scale_kernel(x_ref, s_ref, o_ref):
    o_ref[0] = x_ref[0] * s_ref[0]


@functools.partial(jax.jit, static_argnames=("tr",))
def _scale_call(x, s, *, tr):
    B, Rp, Cp = x.shape
    return pl.pallas_call(
        _scale_kernel,
        out_shape=jax.ShapeDtypeStruct((B, Rp, Cp), jnp.float32),
        grid_spec=pltpu.PrefetchScalarGridSpec(
            num_scalar_prefetch=0,
            grid=(B, Rp // tr),
            in_specs=[
                pl.BlockSpec((1, tr, Cp), lambda b, r: (b, r, 0)),
                pl.BlockSpec((1, 1, Cp), lambda b, r: (b, 0, 0)),
            ],
            out_specs=pl.BlockSpec((1, tr, Cp), lambda b, r: (b, r, 0)),
        ),
        compiler_params=pltpu.CompilerParams(
            dimension_semantics=("parallel", "parallel")),
    )(x, s)


def scale_rows(x, s):
    """x: (B, R, C) * s: (B, C) -> (B, R, C), batched Pallas scaling kernel."""
    B, R, C = x.shape
    tr = min(512, _round_up(R, 8))
    Rp, Cp = _round_up(R, tr), _round_up(C, 128)
    xp = jnp.pad(x.astype(jnp.float32), ((0, 0), (0, Rp - R), (0, Cp - C)))
    sp = jnp.pad(s.astype(jnp.float32), ((0, 0), (0, Cp - C)))[:, None, :]
    return _scale_call(xp, sp, tr=tr)[:, :R, :C]


# ----------------------------------------------------------------------------
# JAX glue helpers
# ----------------------------------------------------------------------------
def im2col_nhwc(x, kh, kw, stride, pad):
    """x: (B,H,W,C) -> (B, Ho*Wo, C*kh*kw) in bf16, patch order (c, dy, dx)."""
    B, H, W, C = x.shape
    xp = jnp.pad(x.astype(jnp.bfloat16),
                 ((0, 0), (pad, pad), (pad, pad), (0, 0)))
    Ho = (H + 2 * pad - kh) // stride + 1
    Wo = (W + 2 * pad - kw) // stride + 1
    cols = []
    for dy in range(kh):
        for dx in range(kw):
            cols.append(xp[:, dy:dy + stride * Ho:stride,
                           dx:dx + stride * Wo:stride, :])
    p = jnp.stack(cols, axis=-1)            # (B,Ho,Wo,C,kh*kw)
    return p.reshape(B, Ho * Wo, C * kh * kw), Ho, Wo


def bn_scale_bias(bn, conv_b=None, eps=1e-5):
    """Fold eval-mode BatchNorm (and optional conv bias) into (scale, bias)."""
    s = bn['gamma'] / jnp.sqrt(bn['var'] + eps)
    t = bn['beta'] - bn['mean'] * s
    if conv_b is not None:
        t = t + conv_b * s
    return s, t


def conv2d_fused(x, w, *, stride=1, pad=0, scale=None, bias=None,
                 act="none", residual=None):
    """x NHWC, w torch-layout (Cout, Cin, kh, kw); epilogue fused in the MXU kernel."""
    B = x.shape[0]
    Cout, Cin, kh, kw = w.shape
    p, Ho, Wo = im2col_nhwc(x, kh, kw, stride, pad)
    a2 = p.reshape(B * Ho * Wo, Cin * kh * kw)
    wm = jnp.transpose(w.reshape(Cout, Cin * kh * kw))
    r2 = None if residual is None else residual.reshape(B * Ho * Wo, Cout)
    y = fused_matmul(a2, wm, scale=scale, bias=bias, act=act, residual=r2)
    return y.reshape(B, Ho, Wo, Cout)


def layernorm(x, g, b, eps=1e-5):
    mu = x.mean(-1, keepdims=True)
    var = ((x - mu) ** 2).mean(-1, keepdims=True)
    return (x - mu) / jnp.sqrt(var + eps) * g + b


def upsample_bilinear(x, scale):
    """NHWC bilinear upsample, align_corners=True (matches the module's Upsample)."""
    B, H, W, C = x.shape
    Ho, Wo = H * scale, W * scale

    def coords(n_in, n_out):
        s = jnp.arange(n_out, dtype=jnp.float32) * (n_in - 1) / max(n_out - 1, 1)
        i0 = jnp.clip(jnp.floor(s).astype(jnp.int32), 0, max(n_in - 2, 0))
        return i0, jnp.minimum(i0 + 1, n_in - 1), s - i0.astype(jnp.float32)

    y0, y1, wy = coords(H, Ho)
    x0, x1, wx = coords(W, Wo)
    r0, r1 = x[:, y0], x[:, y1]

    def cols(r):
        return (r[:, :, x0] * (1.0 - wx)[None, None, :, None]
                + r[:, :, x1] * wx[None, None, :, None])

    return (cols(r0) * (1.0 - wy)[None, :, None, None]
            + cols(r1) * wy[None, :, None, None])


# ----------------------------------------------------------------------------
# Sub-modules
# ----------------------------------------------------------------------------
def basic_block(x, p, stride=1):
    if 'down_w' in p:
        ds, dt = bn_scale_bias(p['down_bn'])
        identity = conv2d_fused(x, p['down_w'], stride=stride, pad=0,
                                scale=ds, bias=dt, act="none")
    else:
        identity = x
    s1, t1 = bn_scale_bias(p['bn1'])
    out = conv2d_fused(x, p['conv1_w'], stride=stride, pad=1,
                       scale=s1, bias=t1, act="relu")
    s2, t2 = bn_scale_bias(p['bn2'])
    # conv2 + BN2 + residual add + ReLU fused into one kernel epilogue.
    return conv2d_fused(out, p['conv2_w'], stride=1, pad=1,
                        scale=s2, bias=t2, act="relu", residual=identity)


def mha(x, p, heads):
    B, L, D = x.shape
    hd = D // heads
    qkv = fused_linear(x, p['qkv_w'], p['qkv_b']).reshape(B, L, 3, heads, hd)
    qkv = qkv.transpose(2, 0, 3, 1, 4)                       # (3,B,H,L,hd)
    q = qkv[0].reshape(B * heads, L, hd)
    k = qkv[1].reshape(B * heads, L, hd)
    v = qkv[2].reshape(B * heads, L, hd)
    # 1/sqrt(hd) folded into the fused matmul epilogue scale.
    scale = jnp.full((L,), 1.0 / math.sqrt(hd), jnp.float32)
    scores = fused_bmm(q, k.transpose(0, 2, 1), scale=scale)
    attn = jax.nn.softmax(scores, axis=-1)
    out = fused_bmm(attn, v).reshape(B, heads, L, hd).transpose(0, 2, 1, 3)
    out = out.reshape(B, L, D)
    return fused_linear(out, p['proj_w'], p['proj_b']), attn


def transformer(x, params, heads):
    attn = None
    for lp in params['layers']:
        h = layernorm(x, lp['ln1_g'], lp['ln1_b'])
        a, attn = mha(h, lp['attn'], heads)
        x = x + a
        h = layernorm(x, lp['ln2_g'], lp['ln2_b'])
        h = fused_linear(h, lp['fc1_w'], lp['fc1_b'])
        h = jax.nn.gelu(h, approximate=False)        # exact erf, like nn.GELU
        x = x + fused_linear(h, lp['fc2_w'], lp['fc2_b'])
    return x, attn


def pyramidformer(x, p, heads, pool, patch_size):
    B, H, W, Cin = x.shape
    if not pool:
        t = conv2d_fused(x, p['embed_w'], stride=patch_size, pad=0,
                         bias=p['embed_b'], act="none")
        d = t.shape[-1]
        tok = t.reshape(B, -1, d)
    else:
        # AdaptiveAvgPool2d to half resolution == exact 2x2 mean (56->28 in the
        # original configuration).
        t = x.reshape(B, H // 2, 2, W // 2, 2, Cin).mean(axis=(2, 4))
        d = Cin
        tok = t.reshape(B, -1, d)
    out, _ = transformer(tok, p['vit'], heads)
    out = out.reshape(B, H // patch_size, W // patch_size, d)
    return upsample_bilinear(out, patch_size)


def se_block(x, p):
    B, H, W, C = x.shape
    y = x.mean(axis=(1, 2))                                        # (B, C)
    y = fused_matmul(y, jnp.transpose(p['fc1_w']), act="relu")
    y = fused_matmul(y, jnp.transpose(p['fc2_w']), act="sigmoid")
    return scale_rows(x.reshape(B, H * W, C), y).reshape(B, H, W, C)


def patch_merging(x_tok, p, H, W):
    B, L, C = x_tok.shape
    x = x_tok.reshape(B, H, W, C)
    x0 = x[:, 0::2, 0::2, :]
    x1 = x[:, 1::2, 0::2, :]
    x2 = x[:, 0::2, 1::2, :]
    x3 = x[:, 1::2, 1::2, :]
    xm = jnp.concatenate([x0, x1, x2, x3], axis=-1).reshape(B, -1, 4 * C)
    xm = layernorm(xm, p['norm_g'], p['norm_b'])
    return fused_linear(xm, p['red_w'])


def decoder_bottleneck(x, p):
    s1, t1 = bn_scale_bias(p['bn1'], conv_b=p['conv1_b'])
    x = conv2d_fused(x, p['conv1_w'], stride=1, pad=1,
                     scale=s1, bias=t1, act="relu")
    s3, t3 = bn_scale_bias(p['bn3'], conv_b=p['conv3_b'])
    return conv2d_fused(x, p['conv3_w'], stride=1, pad=1,
                        scale=s3, bias=t3, act="relu")


def conv_transpose_s4(x, w, b):
    """ConvTranspose2d(kernel=4, stride=4); w torch-layout (Cin, Cout, 4, 4)."""
    B, H, W, Cin = x.shape
    Cout = w.shape[1]
    t = jnp.repeat(b, 16)                       # bias per (cout, ky, kx) column
    y = fused_matmul(x.reshape(B * H * W, Cin), w.reshape(Cin, Cout * 16),
                     bias=t)
    y = y.reshape(B, H, W, Cout, 4, 4).transpose(0, 1, 4, 2, 5, 3)
    return y.reshape(B, H * 4, W * 4, Cout)


# ----------------------------------------------------------------------------
# Full DeepTR forward
# ----------------------------------------------------------------------------
def deeptr_forward(x_nchw, P, heads=4, patch_sizes=(8, 4, 2, 2)):
    B = x_nchw.shape[0]
    x = jnp.tile(x_nchw, (1, 3, 1, 1))                 # x.repeat(1, 3, 1, 1)
    x = jnp.transpose(x, (0, 2, 3, 1))                 # NCHW -> NHWC

    s0, t0 = bn_scale_bias(P['bn1'])
    e0 = conv2d_fused(x, P['conv1_w'], stride=2, pad=3,
                      scale=s0, bias=t0, act="relu")

    e1 = e0
    for bp in P['layer1']:
        e1 = basic_block(e1, bp, stride=1)

    e2 = basic_block(e1, P['layer2'][0], stride=2)
    for bp in P['layer2'][1:]:
        e2 = basic_block(e2, bp, stride=1)

    H1, W1 = e1.shape[1], e1.shape[2]
    H2, W2 = e2.shape[1], e2.shape[2]

    branches = [pyramidformer(e2, P[f'ms{i + 1}'], heads, pool=False,
                              patch_size=ps)
                for i, ps in enumerate(patch_sizes)]
    branches.append(pyramidformer(e2, P['ms5'], heads, pool=True, patch_size=2))

    # project: per-branch 1x1 conv, partial results chained through the fused
    # residual input (equivalent to concat(M1..M5) -> Conv2d(4*dim+128, 512)).
    Wp = P['proj_w']                                   # (512, 4*dim+128)
    M_out_flat, off = None, 0
    for Mi in branches:
        Ci = Mi.shape[-1]
        Wi = jnp.transpose(Wp[:, off:off + Ci])        # (Ci, 512)
        a2 = Mi.reshape(B * H2 * W2, Ci)
        if M_out_flat is None:
            M_out_flat = fused_matmul(a2, Wi, bias=P['proj_b'])
        else:
            M_out_flat = fused_matmul(a2, Wi, residual=M_out_flat)
        off += Ci
    M_out = M_out_flat.reshape(B, H2, W2, 512)

    e1_tok = e1.reshape(B, H1 * W1, e1.shape[-1])
    e1_m = patch_merging(e1_tok, P['merge1'], H1, W1)
    e1_m = e1_m.reshape(B, H2, W2, 128)

    low = jnp.concatenate([e2, e1_m], axis=-1)               # (B,H2,W2,256)
    low_se = se_block(low, P['low_se'])
    low_cat = jnp.concatenate([low_se, M_out], axis=-1)      # (B,H2,W2,768)
    low_cat_se = decoder_bottleneck(low_cat, P['decoder1'])

    out = conv_transpose_s4(low_cat_se, P['up_w'], P['up_b'])
    Bh, Hh, Wh, _ = out.shape
    out = fused_matmul(out.reshape(Bh * Hh * Wh, 64),
                       jnp.transpose(P['out_w']), bias=P['out_b'])
    out = out.reshape(Bh, Hh, Wh, -1)
    return jnp.transpose(out, (0, 3, 1, 2))                  # back to NCHW


# ----------------------------------------------------------------------------
# Deterministic synthetic parameters (shapes follow DeepTR.__init__)
# ----------------------------------------------------------------------------
def init_params(seed=0, dim=128, depth=1, num_classes=9, patch_sizes=(8, 4, 2, 2)):
    key = jax.random.PRNGKey(seed)

    def nxt():
        nonlocal key
        key, k = jax.random.split(key)
        return k

    def w(shape):
        fan_in = 1
        for d in shape[1:]:
            fan_in *= d
        std = 1.0 / math.sqrt(max(fan_in, 1))
        return std * jax.random.normal(nxt(), shape, jnp.float32)

    def bn(c):
        return dict(gamma=jnp.ones((c,), jnp.float32),
                    beta=jnp.zeros((c,), jnp.float32),
                    mean=jnp.zeros((c,), jnp.float32),
                    var=jnp.ones((c,), jnp.float32))

    def z(c):
        return jnp.zeros((c,), jnp.float32)

    def vit(d, mlp_dim):
        layers = []
        for _ in range(depth):
            layers.append(dict(
                ln1_g=jnp.ones((d,), jnp.float32), ln1_b=z(d),
                attn=dict(qkv_w=w((3 * d, d)), qkv_b=z(3 * d),
                          proj_w=w((d, d)), proj_b=z(d)),
                ln2_g=jnp.ones((d,), jnp.float32), ln2_b=z(d),
                fc1_w=w((mlp_dim, d)), fc1_b=z(mlp_dim),
                fc2_w=w((d, mlp_dim)), fc2_b=z(d)))
        return dict(layers=layers)

    P = {'conv1_w': w((64, 3, 7, 7)), 'bn1': bn(64)}
    P['layer1'] = [dict(conv1_w=w((64, 64, 3, 3)), bn1=bn(64),
                        conv2_w=w((64, 64, 3, 3)), bn2=bn(64))
                   for _ in range(3)]
    l2 = [dict(conv1_w=w((128, 64, 3, 3)), bn1=bn(128),
               conv2_w=w((128, 128, 3, 3)), bn2=bn(128),
               down_w=w((128, 64, 1, 1)), down_bn=bn(128))]
    for _ in range(3):
        l2.append(dict(conv1_w=w((128, 128, 3, 3)), bn1=bn(128),
                       conv2_w=w((128, 128, 3, 3)), bn2=bn(128)))
    P['layer2'] = l2

    for i, ps in enumerate(patch_sizes, start=1):
        P[f'ms{i}'] = dict(embed_w=w((dim, 128, ps, ps)), embed_b=z(dim),
                           vit=vit(dim, 2 * ps))
    P['ms5'] = dict(vit=vit(128, 2 * 128))

    P['proj_w'] = w((512, 4 * dim + 128))          # 1x1 conv stored 2-D
    P['proj_b'] = z(512)
    # NOTE: self.cat_se (SEBlock(768)) is unused in DeepTR.forward -> omitted.
    P['low_se'] = dict(fc1_w=w((256 // 16, 256)), fc2_w=w((256, 256 // 16)))
    P['decoder1'] = dict(conv1_w=w((768, 768, 3, 3)), conv1_b=z(768), bn1=bn(768),
                         conv3_w=w((768, 768, 3, 3)), conv3_b=z(768), bn3=bn(768))
    P['up_w'] = w((768, 64, 4, 4))
    P['up_b'] = z(64)
    P['out_w'] = w((num_classes, 64))              # 1x1 conv stored 2-D
    P['out_b'] = z(num_classes)
    P['merge1'] = dict(norm_g=jnp.ones((256,), jnp.float32), norm_b=z(256),
                       red_w=w((128, 256)))
    return P


if __name__ == "__main__":
    # Small configuration (same graph structure as the 224x224 default):
    # input 64x64 -> e1 32x32x64 -> e2 16x16x128, patch sizes (8,4,2,2),
    # dim=128, depth=1, heads=4, PatchMerging at (32,32), pool to 8x8.
    heads = 4
    patch_sizes = (8, 4, 2, 2)
    key = jax.random.PRNGKey(0)
    x = jax.random.normal(key, (1, 1, 64, 64), jnp.float32)

    params = init_params(seed=0, dim=128, depth=1, num_classes=9,
                         patch_sizes=patch_sizes)

    # One outer jit: removes per-op dispatch between the many pallas_calls and
    # lets XLA fuse the thin glue (pad/reshape/softmax/layernorm/upsample).
    fwd = jax.jit(functools.partial(deeptr_forward, heads=heads,
                                    patch_sizes=patch_sizes))
    out = fwd(x, params)
    out = jax.block_until_ready(out)

    assert out.shape == (1, 9, 64, 64), out.shape
    assert bool(jnp.all(jnp.isfinite(out)))
    print("KERNEL_OK")
</pallas_src>

<mosaic_0001>
module attributes {stable_mosaic.version = 11 : i64} {
  func.func @_mm_kernel(%arg0: i32, %arg1: i32, %arg2: i32, %arg3: i32, %arg4: memref<1x1024x256xbf16, #tpu.memory_space<vmem>>, %arg5: memref<1x256x128xbf16, #tpu.memory_space<vmem>>, %arg6: memref<1x128xf32, #tpu.memory_space<vmem>>, %arg7: memref<1x128xf32, #tpu.memory_space<vmem>>, %arg8: memref<1x1024x128xf32, #tpu.memory_space<vmem>>, %arg9: memref<1024x128xf32, #tpu.memory_space<vmem>>) attributes {dimension_semantics = [#tpu.dimension_semantics<parallel>, #tpu.dimension_semantics<parallel>, #tpu.dimension_semantics<parallel>, #tpu.dimension_semantics<arbitrary>], iteration_bounds = array<i64: 1, 1, 1, 1>, scalar_prefetch = 0 : i64, scratch_operands = 1 : i64, tpu.core_type = #tpu.core_type<tc>, window_params = [{transform_indices = @transform_0, window_bounds = array<i64: 1, 1024, 256>}, {transform_indices = @transform_1, window_bounds = array<i64: 1, 256, 128>}, {transform_indices = @transform_2, window_bounds = array<i64: 1, 128>}, {transform_indices = @transform_3, window_bounds = array<i64: 1, 128>}, {transform_indices = @transform_4, window_bounds = array<i64: 1, 1024, 128>}]} {
    %c0_i32 = arith.constant 0 : i32
    %0 = arith.cmpi eq, %arg3, %c0_i32 : i32
    %1 = arith.extui %0 : i1 to i32
    %c0_i32_0 = arith.constant 0 : i32
    %2 = arith.cmpi ne, %1, %c0_i32_0 : i32
    scf.if %2 {
      %cst_12 = arith.constant 0.000000e+00 : f32
      %14 = vector.broadcast %cst_12 : f32 to vector<1024x128xf32>
      %c0_13 = arith.constant 0 : index
      %c0_14 = arith.constant 0 : index
      %15 = vector.load %arg9[%c0_13, %c0_14] : memref<1024x128xf32, #tpu.memory_space<vmem>>, vector<1024x128xf32>
      tpu.vector_store %arg9[%c0_13, %c0_14], %14 {strides = array<i32>} : memref<1024x128xf32, #tpu.memory_space<vmem>>, vector<1024x128xf32>,
    } else {
    }
    %c0 = arith.constant 0 : index
    %c0_1 = arith.constant 0 : index
    %3 = vector.load %arg9[%c0, %c0_1] : memref<1024x128xf32, #tpu.memory_space<vmem>>, vector<1024x128xf32>
    %c0_2 = arith.constant 0 : index
    %c0_3 = arith.constant 0 : index
    %c0_4 = arith.constant 0 : index
    %4 = vector.load %arg4[%c0_2, %c0_3, %c0_4] : memref<1x1024x256xbf16, #tpu.memory_space<vmem>>, vector<1x1024x256xbf16>
    %5 = vector.shape_cast %4 : vector<1x1024x256xbf16> to vector<1024x256xbf16>
    %c0_5 = arith.constant 0 : index
    %c0_6 = arith.constant 0 : index
    %c0_7 = arith.constant 0 : index
    %6 = vector.load %arg5[%c0_5, %c0_6, %c0_7] : memref<1x256x128xbf16, #tpu.memory_space<vmem>>, vector<1x256x128xbf16>
    %7 = vector.shape_cast %6 : vector<1x256x128xbf16> to vector<256x128xbf16>
    %cst = arith.constant dense<0.000000e+00> : vector<1024x128xf32>
    %8 = tpu.matmul %5, %7, %cst {dimension_numbers = #tpu.dot_dimension_numbers<[1], [0], [0], [1], [0, 0, 1, 1], [], []>} : vector<1024x256xbf16>, vector<256x128xbf16>, vector<1024x128xf32> -> vector<1024x128xf32>
    %9 = arith.addf %3, %8 : vector<1024x128xf32>
    %c0_8 = arith.constant 0 : index
    %c0_9 = arith.constant 0 : index
    %10 = vector.load %arg9[%c0_8, %c0_9] : memref<1024x128xf32, #tpu.memory_space<vmem>>, vector<1024x128xf32>
    tpu.vector_store %arg9[%c0_8, %c0_9], %9 {strides = array<i32>} : memref<1024x128xf32, #tpu.memory_space<vmem>>, vector<1024x128xf32>,
    %c0_i32_10 = arith.constant 0 : i32
    %11 = arith.cmpi eq, %arg3, %c0_i32_10 : i32
    %12 = arith.extui %11 : i1 to i32
    %c0_i32_11 = arith.constant 0 : i32
    %13 = arith.cmpi ne, %12, %c0_i32_11 : i32
    scf.if %13 {
      %c0_12 = arith.constant 0 : index
      %c0_13 = arith.constant 0 : index
      %14 = vector.load %arg9[%c0_12, %c0_13] : memref<1024x128xf32, #tpu.memory_space<vmem>>, vector<1024x128xf32>
      %c0_14 = arith.constant 0 : index
      %c0_15 = arith.constant 0 : index
      %15 = vector.load %arg6[%c0_14, %c0_15] : memref<1x128xf32, #tpu.memory_space<vmem>>, vector<1x128xf32>
      %16 = vector.broadcast %15 : vector<1x128xf32> to vector<1024x128xf32>
      %17 = arith.mulf %14, %16 : vector<1024x128xf32>
      %c0_16 = arith.constant 0 : index
      %c0_17 = arith.constant 0 : index
      %18 = vector.load %arg7[%c0_16, %c0_17] : memref<1x128xf32, #tpu.memory_space<vmem>>, vector<1x128xf32>
      %19 = vector.broadcast %18 : vector<1x128xf32> to vector<1024x128xf32>
      %20 = arith.addf %17, %19 : vector<1024x128xf32>
      %cst_18 = arith.constant 0.000000e+00 : f32
      %21 = vector.broadcast %cst_18 : f32 to vector<1024x128xf32>
      %22 = arith.maximumf %20, %21 : vector<1024x128xf32>
      %c0_19 = arith.constant 0 : index
      %c0_20 = arith.constant 0 : index
      %c0_21 = arith.constant 0 : index
      %23 = vector.load %arg8[%c0_19, %c0_20, %c0_21] : memref<1x1024x128xf32, #tpu.memory_space<vmem>>, vector<1x1024x128xf32>
      %24 = vector.shape_cast %23 : vector<1x1024x128xf32> to vector<1024x128xf32>
      %25 = vector.shape_cast %22 : vector<1024x128xf32> to vector<1x1024x128xf32>
      tpu.vector_store %arg8[%c0_19, %c0_20, %c0_21], %25 {strides = array<i32>} : memref<1x1024x128xf32, #tpu.memory_space<vmem>>, vector<1x1024x128xf32>,
    } else {
    }
    return
  }
  func.func @transform_0(%arg0: i32, %arg1: i32, %arg2: i32, %arg3: i32) -> (i32, i32, i32) {
    %c0_i32 = arith.constant 0 : i32
    return %arg0, %arg1, %arg3 : i32, i32, i32
  }
  func.func @transform_1(%arg0: i32, %arg1: i32, %arg2: i32, %arg3: i32) -> (i32, i32, i32) {
    %c0_i32 = arith.constant 0 : i32
    return %arg0, %arg3, %arg2 : i32, i32, i32
  }
  func.func @transform_2(%arg0: i32, %arg1: i32, %arg2: i32, %arg3: i32) -> (i32, i32) {
    %c0_i32 = arith.constant 0 : i32
    %c0_i32_0 = arith.constant 0 : i32
    return %c0_i32, %arg2 : i32, i32
  }
  func.func @transform_3(%arg0: i32, %arg1: i32, %arg2: i32, %arg3: i32) -> (i32, i32) {
    %c0_i32 = arith.constant 0 : i32
    %c0_i32_0 = arith.constant 0 : i32
    return %c0_i32, %arg2 : i32, i32
  }
  func.func @transform_4(%arg0: i32, %arg1: i32, %arg2: i32, %arg3: i32) -> (i32, i32, i32) {
    %c0_i32 = arith.constant 0 : i32
    return %arg0, %arg1, %arg2 : i32, i32, i32
  }
}

</mosaic_0001>

<bundles_post_ra>
// kernel: _mm_fused.1
= control target key start
LH: loop header
LB: loop body
LE: loop exit
PB: predicated region body
PF: predicated region fallthrough
CT: control target
= control target key end

     0   :  { %9 = vsyncpa [#allocation4], 0  ;;  %s3497_s0 = inlined_call_operand.hbm [shape: bf16[1,1024,256], index: 0, kind: input, shape index: {}]   ;;  %s3498_s1 = inlined_call_operand.hbm [shape: bf16[1,256,128], index: 1, kind: input, shape index: {}]   ;;  %s3499_s2 = inlined_call_operand.vmem [shape: f32[1,128], index: 2, kind: input, shape index: {}]   ;;  %s3500_s3 = inlined_call_operand.vmem [shape: f32[1,128], index: 3, kind: input, shape index: {}]   ;;  %s3501_s4 = inlined_call_operand.hbm [shape: f32[1,1024,128], index: 4, kind: output, shape index: {}]  }
   0x1   :  { %10 = vsyncpa [#allocation7], 0 }
   0x2   :  { %11 = vsyncpa [#allocation5], 0  ;;  %s3141_s15 = smov [#allocation3]  }
   0x3   :  { %s17_s16 = sshll.u32 %s3141_s15, 4  ;;  %s18_s16 = int_to_ptr.vmem [resolvable:$true] %s17_s16 }
   0x4   :  { %s3083_s17 = scalar_lea.vmem %s18_s16, 16384  ;;  %p3088_p1 = scmp.lt.s32.totalorder %s18_s16, %s18_s16 }
   0x5   :  { %p3084_p0 = scmp.ne.s32.totalorder %s18_s16, %s3083_s17  ;;  %p3089_p2 = scmp.lt.s32.totalorder %s3083_s17, %s3083_s17 }
   0x7   :  { %p3090_p3 = por %p3089_p2, %p3088_p1 }
   0x9   :  { %p3091_p4 = pnand %p3090_p3, %p3084_p0 }
   0xb   :  { %3094 = shalt.err (!%p3091_p4)
}
   0xc   :  { %s3142_s18 = smov 128   ;;  %s3143_s19 = smov 8  }
   0xd   :  { %23 = dma.hbm_to_vmem [thread:$0]  %s3497_s0, 16384, %s18_s16, [#allocation4], %s3142_s18, %s3142_s18, %s3143_s19  }
   0xe   :  { %s3144_s22 = smov [#allocation6]  }
   0xf   :  { %s29_s23 = sshll.u32 %s3144_s22, 4  ;;  %s30_s23 = int_to_ptr.vmem [resolvable:$true] %s29_s23 }
  0x10   :  { %s3103_s24 = scalar_lea.vmem %s30_s23, 2048  ;;  %p3108_p6 = scmp.lt.s32.totalorder %s30_s23, %s30_s23 }
  0x11   :  { %p3104_p5 = scmp.ne.s32.totalorder %s30_s23, %s3103_s24  ;;  %p3109_p7 = scmp.lt.s32.totalorder %s3103_s24, %s3103_s24 }
  0x13   :  { %p3110_p8 = por %p3109_p7, %p3108_p6 }
  0x15   :  { %p3111_p9 = pnand %p3110_p8, %p3104_p5 }
  0x17   :  { %3114 = shalt.err (!%p3111_p9)
}
  0x18   :  { %s3145_s25 = smov 64   ;;  %s3146_s26 = smov 4  }
  0x19   :  { %35 = dma.hbm_to_vmem [thread:$0]  %s3498_s1, 2048, %s30_s23, [#allocation7], %s3145_s25, %s3145_s25, %s3146_s26  }
  0x1a   :  { %3135 = dma.done.wait [#allocation4], 16384  }
  0x1b   :  { %3136 = vsyncadd [#allocation4], 4294950912 }
  0x1c   :  { %3137 = dma.done.wait [#allocation7], 2048  }
  0x1d   :  { %3138 = vsyncadd [#allocation7], 4294965248  ;;  %v3147_v0 = vmov 0   ;;  %v2865_v1 = vld [vmem:[#allocation6 + $0x38] sm:$0xff]   ;;  %v2866_v2 = vld [vmem:[#allocation6 + $0x30] sm:$0xff]  }
  0x1e   :  { %1203 = vmatprep.subr.bf16.mxu0 %v3147_v0  ;;  %2825 = vmatprep.subr.bf16.mxu1 %v3147_v0  ;;  %v2867_v3 = vld [vmem:[#allocation6 + $0x28] sm:$0xff]   ;;  %v2868_v4 = vld [vmem:[#allocation6 + $0x20] sm:$0xff]   ;;  %v2869_v5 = vld [vmem:[#allocation6 + $0x18] sm:$0xff]  }
  0x1f   :  { %1204 = vmatpush1.bf16.msra.mxu0 %v2865_v1  ;;  %2841 = vmatpush1.bf16.msra.mxu1 %v2865_v1  ;;  %v2883_v6 = vld [vmem:[#allocation3 + $0x4] ss:$8 sps:$4 sm:$0xff]   ;;  %v2870_v7 = vld [vmem:[#allocation6 + $0x10] sm:$0xff]   ;;  %v2873_v11 = vld [vmem:[#allocation6 + $0x78] sm:$0xff]  }
  0x20   :  { %1205 = vmatprep.subr.bf16.mxu0 %v3147_v0  ;;  %2826 = vmatprep.subr.bf16.mxu1 %v3147_v0  ;;  %v2886_v8 = vld [vmem:[#allocation3 + $0x204] ss:$8 sps:$4 sm:$0xff]   ;;  %v2874_v12 = vld [vmem:[#allocation6 + $0x70] sm:$0xff]   ;;  %v2877_v15 = vld [vmem:[#allocation6 + $0x58] sm:$0xff]  }
  0x21   :  { %1235 = vmatprep.mubr.bf16.mxu0 %v2883_v6  ;;  %1491 = vmatprep.mubr.bf16.mxu1 %v2886_v8  ;;  %v2871_v9 = vld [vmem:[#allocation6 + $0x8] sm:$0xff]   ;;  %v2872_v10 = vld [vmem:[#allocation6] sm:$0xff]   ;;  %v2878_v16 = vld [vmem:[#allocation6 + $0x50] sm:$0xff]  }
  0x22   :  { %v2875_v13 = vld [vmem:[#allocation6 + $0x68] sm:$0xff]   ;;  %v2876_v14 = vld [vmem:[#allocation6 + $0x60] sm:$0xff]   ;;  %v2887_v21 = vld [vmem:[#allocation3 + $0x14] ss:$8 sps:$4 sm:$0xff]  }
  0x23   :  { %1206 = vmatpush1.bf16.msra.mxu0 %v2866_v2  ;;  %2842 = vmatpush1.bf16.msra.mxu1 %v2866_v2  ;;  %v2879_v17 = vld [vmem:[#allocation6 + $0x48] sm:$0xff]   ;;  %v2880_v18 = vld [vmem:[#allocation6 + $0x40] sm:$0xff]   ;;  %v2889_v22 = vld [vmem:[#allocation3 + $0x214] ss:$8 sps:$4 sm:$0xff]  }
  0x24   :  { %1207 = vmatprep.subr.bf16.mxu0 %v3147_v0  ;;  %2827 = vmatprep.subr.bf16.mxu1 %v3147_v0  ;;  %v2881_v19 = vld [vmem:[#allocation3] ss:$8 sps:$4 sm:$0xff]   ;;  %v2891_v23 = vld [vmem:[#allocation3 + $0x10] ss:$8 sps:$4 sm:$0xff]   ;;  %v2893_v25 = vld [vmem:[#allocation3 + $0x24] ss:$8 sps:$4 sm:$0xff]  }
  0x25   :  { %v2884_v20 = vld [vmem:[#allocation3 + $0x200] ss:$8 sps:$4 sm:$0xff]   ;;  %v2892_v24 = vld [vmem:[#allocation3 + $0x210] ss:$8 sps:$4 sm:$0xff]   ;;  %v2895_v26 = vld [vmem:[#allocation3 + $0x224] ss:$8 sps:$4 sm:$0xff]  }
  0x26   :  { %v2897_v27 = vld [vmem:[#allocation3 + $0x20] ss:$8 sps:$4 sm:$0xff]   ;;  %v2899_v29 = vld [vmem:[#allocation3 + $0x34] ss:$8 sps:$4 sm:$0xff]   ;;  %v2903_v31 = vld [vmem:[#allocation3 + $0x30] ss:$8 sps:$4 sm:$0xff]  }
  0x27   :  { %1208 = vmatpush1.bf16.msra.mxu0 %v2867_v3  ;;  %2843 = vmatpush1.bf16.msra.mxu1 %v2867_v3  ;;  %v2898_v28 = vld [vmem:[#allocation3 + $0x220] ss:$8 sps:$4 sm:$0xff]   ;;  %v2901_v30 = vld [vmem:[#allocation3 + $0x234] ss:$8 sps:$4 sm:$0xff]   ;;  %v2904_v32 = vld [vmem:[#allocation3 + $0x230] ss:$8 sps:$4 sm:$0xff]  }
  0x28   :  { %1209 = vmatprep.subr.bf16.mxu0 %v3147_v0  ;;  %2828 = vmatprep.subr.bf16.mxu1 %v3147_v0  ;;  %v2905_v33 = vld [vmem:[#allocation3 + $0x44] ss:$8 sps:$4 sm:$0xff]   ;;  %v2909_v35 = vld [vmem:[#allocation3 + $0x40] ss:$8 sps:$4 sm:$0xff]   ;;  %v2911_v37 = vld [vmem:[#allocation3 + $0x54] ss:$8 sps:$4 sm:$0xff]  }
  0x29   :  { %v2907_v34 = vld [vmem:[#allocation3 + $0x244] ss:$8 sps:$4 sm:$0xff]   ;;  %v2910_v36 = vld [vmem:[#allocation3 + $0x240] ss:$8 sps:$4 sm:$0xff]   ;;  %v2913_v38 = vld [vmem:[#allocation3 + $0x254] ss:$8 sps:$4 sm:$0xff]  }
  0x2a   :  { %v2915_v39 = vld [vmem:[#allocation3 + $0x50] ss:$8 sps:$4 sm:$0xff]   ;;  %v2917_v41 = vld [vmem:[#allocation3 + $0x64] ss:$8 sps:$4 sm:$0xff]   ;;  %v2921_v43 = vld [vmem:[#allocation3 + $0x60] ss:$8 sps:$4 sm:$0xff]  }
  0x2b   :  { %1210 = vmatpush1.bf16.msra.mxu0 %v2868_v4  ;;  %2844 = vmatpush1.bf16.msra.mxu1 %v2868_v4  ;;  %v2916_v40 = vld [vmem:[#allocation3 + $0x250] ss:$8 sps:$4 sm:$0xff]   ;;  %v2919_v42 = vld [vmem:[#allocation3 + $0x264] ss:$8 sps:$4 sm:$0xff]   ;;  %v2922_v44 = vld [vmem:[#allocation3 + $0x260] ss:$8 sps:$4 sm:$0xff]  }
  0x2c   :  { %1211 = vmatprep.subr.bf16.mxu0 %v3147_v0  ;;  %2829 = vmatprep.subr.bf16.mxu1 %v3147_v0  ;;  %v2923_v45 = vld [vmem:[#allocation3 + $0x74] ss:$8 sps:$4 sm:$0xff]   ;;  %v2927_v47 = vld [vmem:[#allocation3 + $0x70] ss:$8 sps:$4 sm:$0xff]   ;;  %v2929_v49 = vld [vmem:[#allocation3 + $0x84] ss:$8 sps:$4 sm:$0xff]  }
  0x2d   :  { %v2925_v46 = vld [vmem:[#allocation3 + $0x274] ss:$8 sps:$4 sm:$0xff]   ;;  %v2928_v48 = vld [vmem:[#allocation3 + $0x270] ss:$8 sps:$4 sm:$0xff]   ;;  %v2931_v50 = vld [vmem:[#allocation3 + $0x284] ss:$8 sps:$4 sm:$0xff]  }
  0x2e   :  { %v2933_v51 = vld [vmem:[#allocation3 + $0x80] ss:$8 sps:$4 sm:$0xff]   ;;  %v2935_v53 = vld [vmem:[#allocation3 + $0x94] ss:$8 sps:$4 sm:$0xff]   ;;  %v2939_v55 = vld [vmem:[#allocation3 + $0x90] ss:$8 sps:$4 sm:$0xff]  }
  0x2f   :  { %1212 = vmatpush1.bf16.msra.mxu0 %v2869_v5  ;;  %2845 = vmatpush1.bf16.msra.mxu1 %v2869_v5  ;;  %v2934_v52 = vld [vmem:[#allocation3 + $0x280] ss:$8 sps:$4 sm:$0xff]   ;;  %v2937_v54 = vld [vmem:[#allocation3 + $0x294] ss:$8 sps:$4 sm:$0xff]   ;;  %v2940_v56 = vld [vmem:[#allocation3 + $0x290] ss:$8 sps:$4 sm:$0xff]  }
  0x30   :  { %1213 = vmatprep.subr.bf16.mxu0 %v3147_v0  ;;  %2830 = vmatprep.subr.bf16.mxu1 %v3147_v0  ;;  %v2941_v57 = vld [vmem:[#allocation3 + $0xa4] ss:$8 sps:$4 sm:$0xff]   ;;  %v2945_v59 = vld [vmem:[#allocation3 + $0xa0] ss:$8 sps:$4 sm:$0xff]   ;;  %v2947_v61 = vld [vmem:[#allocation3 + $0xb4] ss:$8 sps:$4 sm:$0xff]  }
  0x31   :  { %v2943_v58 = vld [vmem:[#allocation3 + $0x2a4] ss:$8 sps:$4 sm:$0xff]   ;;  %v2946_v60 = vld [vmem:[#allocation3 + $0x2a0] ss:$8 sps:$4 sm:$0xff]   ;;  %v2949_v62 = vld [vmem:[#allocation3 + $0x2b4] ss:$8 sps:$4 sm:$0xff]  }
  0x32   :  { %v2951_v63 = vld [vmem:[#allocation3 + $0xb0] ss:$8 sps:$4 sm:$0xff]   ;;  %v2953_v1 = vld [vmem:[#allocation3 + $0xc4] ss:$8 sps:$4 sm:$0xff]   ;;  %v2957_v3 = vld [vmem:[#allocation3 + $0xc0] ss:$8 sps:$4 sm:$0xff]  }
  0x33   :  { %1214 = vmatpush1.bf16.msra.mxu0 %v2870_v7  ;;  %2846 = vmatpush1.bf16.msra.mxu1 %v2870_v7  ;;  %v2955_v2 = vld [vmem:[#allocation3 + $0x2c4] ss:$8 sps:$4 sm:$0xff]   ;;  %v2958_v4 = vld [vmem:[#allocation3 + $0x2c0] ss:$8 sps:$4 sm:$0xff]   ;;  %v2959_v5 = vld [vmem:[#allocation3 + $0xd4] ss:$8 sps:$4 sm:$0xff]  }
  0x34   :  { %1215 = vmatprep.subr.bf16.mxu0 %v3147_v0  ;;  %2831 = vmatprep.subr.bf16.mxu1 %v3147_v0  ;;  %v2961_v6 = vld [vmem:[#allocation3 + $0x2d4] ss:$8 sps:$4 sm:$0xff]   ;;  %v2963_v7 = vld [vmem:[#allocation3 + $0xd0] ss:$8 sps:$4 sm:$0xff]  }
  0x35   :  { %v2964_v8 = vld [vmem:[#allocation3 + $0x2d0] ss:$8 sps:$4 sm:$0xff]  }
  0x37   :  { %1216 = vmatpush1.bf16.msra.mxu0 %v2871_v9  ;;  %2847 = vmatpush1.bf16.msra.mxu1 %v2871_v9  ;;  %v2965_v9 = vld [vmem:[#allocation3 + $0xe4] ss:$8 sps:$4 sm:$0xff]  }
  0x38   :  { %1217 = vmatprep.subr.bf16.mxu0 %v3147_v0  ;;  %2832 = vmatprep.subr.bf16.mxu1 %v3147_v0 }
  0x3b   :  { %1218 = vmatpush1.bf16.msra.mxu0 %v2872_v10  ;;  %2848 = vmatpush1.bf16.msra.mxu1 %v2872_v10  ;;  %v2967_v10 = vld [vmem:[#allocation3 + $0x2e4] ss:$8 sps:$4 sm:$0xff]  }
  0x3c   :  { %1219 = vmatprep.subr.bf16.mxu0 %v3147_v0  ;;  %2833 = vmatprep.subr.bf16.mxu1 %v3147_v0 }
  0x3f   :  { %1220 = vmatpush2.bf16.msra.mxu0 %v2873_v11  ;;  %2849 = vmatpush2.bf16.msra.mxu1 %v2873_v11  ;;  %v2969_v11 = vld [vmem:[#allocation3 + $0xe0] ss:$8 sps:$4 sm:$0xff]  }
  0x40   :  { %1221 = vmatprep.subr.bf16.mxu0 %v3147_v0  ;;  %2834 = vmatprep.subr.bf16.mxu1 %v3147_v0 }
  0x43   :  { %1222 = vmatpush2.bf16.msra.mxu0 %v2874_v12  ;;  %2850 = vmatpush2.bf16.msra.mxu1 %v2874_v12  ;;  %v2970_v12 = vld [vmem:[#allocation3 + $0x2e0] ss:$8 sps:$4 sm:$0xff]  }
  0x44   :  { %1223 = vmatprep.subr.bf16.mxu0 %v3147_v0  ;;  %2835 = vmatprep.subr.bf16.mxu1 %v3147_v0 }
  0x47   :  { %1224 = vmatpush2.bf16.msra.mxu0 %v2875_v13  ;;  %2851 = vmatpush2.bf16.msra.mxu1 %v2875_v13  ;;  %v2971_v13 = vld [vmem:[#allocation3 + $0xf4] ss:$8 sps:$4 sm:$0xff]  }
  0x48   :  { %1225 = vmatprep.subr.bf16.mxu0 %v3147_v0  ;;  %2836 = vmatprep.subr.bf16.mxu1 %v3147_v0 }
  0x4b   :  { %1226 = vmatpush2.bf16.msra.mxu0 %v2876_v14  ;;  %2852 = vmatpush2.bf16.msra.mxu1 %v2876_v14  ;;  %v2973_v14 = vld [vmem:[#allocation3 + $0x2f4] ss:$8 sps:$4 sm:$0xff]  }
  0x4c   :  { %1227 = vmatprep.subr.bf16.mxu0 %v3147_v0  ;;  %2837 = vmatprep.subr.bf16.mxu1 %v3147_v0 }
  0x4f   :  { %1228 = vmatpush2.bf16.msra.mxu0 %v2877_v15  ;;  %2853 = vmatpush2.bf16.msra.mxu1 %v2877_v15  ;;  %v2975_v15 = vld [vmem:[#allocation3 + $0xf0] ss:$8 sps:$4 sm:$0xff]  }
  0x50   :  { %1229 = vmatprep.subr.bf16.mxu0 %v3147_v0  ;;  %2838 = vmatprep.subr.bf16.mxu1 %v3147_v0 }
  0x53   :  { %1230 = vmatpush2.bf16.msra.mxu0 %v2878_v16  ;;  %2854 = vmatpush2.bf16.msra.mxu1 %v2878_v16  ;;  %v2976_v16 = vld [vmem:[#allocation3 + $0x2f0] ss:$8 sps:$4 sm:$0xff]  }
  0x54   :  { %1231 = vmatprep.subr.bf16.mxu0 %v3147_v0  ;;  %2839 = vmatprep.subr.bf16.mxu1 %v3147_v0 }
  0x57   :  { %1232 = vmatpush2.bf16.msra.mxu0 %v2879_v17  ;;  %2855 = vmatpush2.bf16.msra.mxu1 %v2879_v17  ;;  %v2977_v17 = vld [vmem:[#allocation3 + $0x104] ss:$8 sps:$4 sm:$0xff]  }
  0x58   :  { %1233 = vmatprep.subr.bf16.mxu0 %v3147_v0  ;;  %2840 = vmatprep.subr.bf16.mxu1 %v3147_v0  ;;  %v2952_v0 = vld [vmem:[#allocation3 + $0x2b0] ss:$8 sps:$4 sm:$0xff]  }
  0x5b   :  { %1234 = vmatpush2.bf16.msra.mxu0 %v2880_v18  ;;  %2856 = vmatpush2.bf16.msra.mxu1 %v2880_v18  ;;  %v2979_v18 = vld [vmem:[#allocation3 + $0x304] ss:$8 sps:$4 sm:$0xff]  }
  0x5e   :  { %1236 = vmatmul.mubr.bf16.vlgmr.msra.gmra.mxu0 %v2881_v19  ;;  %1492 = vmatmul.mubr.bf16.vlgmr.msra.gmra.mxu1 %v2884_v20  ;;  %v2981_v19 = vld [vmem:[#allocation3 + $0x100] ss:$8 sps:$4 sm:$0xff]  }
  0x5f   :  { %1243 = vmatprep.mubr.bf16.mxu0 %v2887_v21  ;;  %1499 = vmatprep.mubr.bf16.mxu1 %v2889_v22  ;;  %v2982_v20 = vld [vmem:[#allocation3 + $0x300] ss:$8 sps:$4 sm:$0xff]   ;;  %v2983_v21 = vld [vmem:[#allocation3 + $0x114] ss:$8 sps:$4 sm:$0xff]  }
  0x60   :  { %v2985_v22 = vld [vmem:[#allocation3 + $0x314] ss:$8 sps:$4 sm:$0xff]  }
  0x66   :  { %1244 = vmatmul.mubr.bf16.gmra.mxu0 %v2891_v23  ;;  %1500 = vmatmul.mubr.bf16.gmra.mxu1 %v2892_v24  ;;  %v2987_v23 = vld [vmem:[#allocation3 + $0x110] ss:$8 sps:$4 sm:$0xff]  }
  0x67   :  { %1251 = vmatprep.mubr.bf16.mxu0 %v2893_v25  ;;  %1507 = vmatprep.mubr.bf16.mxu1 %v2895_v26  ;;  %v2988_v24 = vld [vmem:[#allocation3 + $0x310] ss:$8 sps:$4 sm:$0xff]   ;;  %v2989_v25 = vld [vmem:[#allocation3 + $0x124] ss:$8 sps:$4 sm:$0xff]  }
  0x68   :  { %v2991_v26 = vld [vmem:[#allocation3 + $0x324] ss:$8 sps:$4 sm:$0xff]  }
  0x6e   :  { %1252 = vmatmul.mubr.bf16.gmra.mxu0 %v2897_v27  ;;  %1508 = vmatmul.mubr.bf16.gmra.mxu1 %v2898_v28  ;;  %v2993_v27 = vld [vmem:[#allocation3 + $0x120] ss:$8 sps:$4 sm:$0xff]  }
  0x6f   :  { %1259 = vmatprep.mubr.bf16.mxu0 %v2899_v29  ;;  %1515 = vmatprep.mubr.bf16.mxu1 %v2901_v30  ;;  %v2994_v28 = vld [vmem:[#allocation3 + $0x320] ss:$8 sps:$4 sm:$0xff]   ;;  %v2995_v29 = vld [vmem:[#allocation3 + $0x134] ss:$8 sps:$4 sm:$0xff]  }
  0x70   :  { %v2997_v30 = vld [vmem:[#allocation3 + $0x334] ss:$8 sps:$4 sm:$0xff]  }
  0x76   :  { %1260 = vmatmul.mubr.bf16.gmra.mxu0 %v2903_v31  ;;  %1516 = vmatmul.mubr.bf16.gmra.mxu1 %v2904_v32  ;;  %v2999_v31 = vld [vmem:[#allocation3 + $0x130] ss:$8 sps:$4 sm:$0xff]  }
  0x77   :  { %1267 = vmatprep.mubr.bf16.mxu0 %v2905_v33  ;;  %1523 = vmatprep.mubr.bf16.mxu1 %v2907_v34  ;;  %v3000_v32 = vld [vmem:[#allocation3 + $0x330] ss:$8 sps:$4 sm:$0xff]   ;;  %v3001_v33 = vld [vmem:[#allocation3 + $0x144] ss:$8 sps:$4 sm:$0xff]  }
  0x78   :  { %v3003_v34 = vld [vmem:[#allocation3 + $0x344] ss:$8 sps:$4 sm:$0xff]  }
  0x7e   :  { %1268 = vmatmul.mubr.bf16.gmra.mxu0 %v2909_v35  ;;  %1524 = vmatmul.mubr.bf16.gmra.mxu1 %v2910_v36  ;;  %v3005_v35 = vld [vmem:[#allocation3 + $0x140] ss:$8 sps:$4 sm:$0xff]  }
  0x7f   :  { %1275 = vmatprep.mubr.bf16.mxu0 %v2911_v37  ;;  %1531 = vmatprep.mubr.bf16.mxu1 %v2913_v38  ;;  %v3006_v36 = vld [vmem:[#allocation3 + $0x340] ss:$8 sps:$4 sm:$0xff]   ;;  %v3007_v37 = vld [vmem:[#allocation3 + $0x154] ss:$8 sps:$4 sm:$0xff]  }
  0x80   :  { %v3009_v38 = vld [vmem:[#allocation3 + $0x354] ss:$8 sps:$4 sm:$0xff]  }
  0x86   :  { %1276 = vmatmul.mubr.bf16.gmra.mxu0 %v2915_v39  ;;  %1532 = vmatmul.mubr.bf16.gmra.mxu1 %v2916_v40  ;;  %v3011_v39 = vld [vmem:[#allocation3 + $0x150] ss:$8 sps:$4 sm:$0xff]  }
  0x87   :  { %1283 = vmatprep.mubr.bf16.mxu0 %v2917_v41  ;;  %1539 = vmatprep.mubr.bf16.mxu1 %v2919_v42  ;;  %v3012_v40 = vld [vmem:[#allocation3 + $0x350] ss:$8 sps:$4 sm:$0xff]   ;;  %v3013_v41 = vld [vmem:[#allocation3 + $0x164] ss:$8 sps:$4 sm:$0xff]  }
  0x88   :  { %v3015_v42 = vld [vmem:[#allocation3 + $0x364] ss:$8 sps:$4 sm:$0xff]  }
  0x8e   :  { %1284 = vmatmul.mubr.bf16.gmra.mxu0 %v2921_v43  ;;  %1540 = vmatmul.mubr.bf16.gmra.mxu1 %v2922_v44  ;;  %v3017_v43 = vld [vmem:[#allocation3 + $0x160] ss:$8 sps:$4 sm:$0xff]  }
  0x8f   :  { %1291 = vmatprep.mubr.bf16.mxu0 %v2923_v45  ;;  %1547 = vmatprep.mubr.bf16.mxu1 %v2925_v46  ;;  %v3018_v44 = vld [vmem:[#allocation3 + $0x360] ss:$8 sps:$4 sm:$0xff]   ;;  %v3019_v45 = vld [vmem:[#allocation3 + $0x174] ss:$8 sps:$4 sm:$0xff]  }
  0x90   :  { %v3021_v46 = vld [vmem:[#allocation3 + $0x374] ss:$8 sps:$4 sm:$0xff]  }
  0x96   :  { %1292 = vmatmul.mubr.bf16.gmra.mxu0 %v2927_v47  ;;  %1548 = vmatmul.mubr.bf16.gmra.mxu1 %v2928_v48  ;;  %v3023_v47 = vld [vmem:[#allocation3 + $0x170] ss:$8 sps:$4 sm:$0xff]  }
  0x97   :  { %1299 = vmatprep.mubr.bf16.mxu0 %v2929_v49  ;;  %1555 = vmatprep.mubr.bf16.mxu1 %v2931_v50  ;;  %v3024_v48 = vld [vmem:[#allocation3 + $0x370] ss:$8 sps:$4 sm:$0xff]   ;;  %v3025_v49 = vld [vmem:[#allocation3 + $0x184] ss:$8 sps:$4 sm:$0xff]  }
  0x98   :  { %v3027_v50 = vld [vmem:[#allocation3 + $0x384] ss:$8 sps:$4 sm:$0xff]  }
  0x9e   :  { %1300 = vmatmul.mubr.bf16.gmra.mxu0 %v2933_v51  ;;  %1556 = vmatmul.mubr.bf16.gmra.mxu1 %v2934_v52  ;;  %v3029_v51 = vld [vmem:[#allocation3 + $0x180] ss:$8 sps:$4 sm:$0xff]  }
  0x9f   :  { %1307 = vmatprep.mubr.bf16.mxu0 %v2935_v53  ;;  %1563 = vmatprep.mubr.bf16.mxu1 %v2937_v54  ;;  %v3030_v52 = vld [vmem:[#allocation3 + $0x380] ss:$8 sps:$4 sm:$0xff]   ;;  %v3031_v53 = vld [vmem:[#allocation3 + $0x194] ss:$8 sps:$4 sm:$0xff]  }
  0xa0   :  { %v3033_v54 = vld [vmem:[#allocation3 + $0x394] ss:$8 sps:$4 sm:$0xff]  }
  0xa6   :  { %1308 = vmatmul.mubr.bf16.gmra.mxu0 %v2939_v55  ;;  %1564 = vmatmul.mubr.bf16.gmra.mxu1 %v2940_v56  ;;  %v3218_v55 = vld [vmem:[%s3499_s2] ss:$0 sm:$0xff] }
  0xa7   :  { %1315 = vmatprep.mubr.bf16.mxu0 %v2941_v57  ;;  %1571 = vmatprep.mubr.bf16.mxu1 %v2943_v58  ;;  %v3223_v57 = vld [vmem:[%s3500_s3] ss:$0 sm:$0xff] }
  0xae   :  { %1316 = vmatmul.mubr.bf16.gmra.mxu0 %v2945_v59  ;;  %1572 = vmatmul.mubr.bf16.gmra.mxu1 %v2946_v60 }
  0xaf   :  { %1323 = vmatprep.mubr.bf16.mxu0 %v2947_v61  ;;  %1579 = vmatprep.mubr.bf16.mxu1 %v2949_v62 }
  0xb6   :  { %1324 = vmatmul.mubr.bf16.gmra.mxu0 %v2951_v63  ;;  %1580 = vmatmul.mubr.bf16.gmra.mxu1 %v2952_v0 }
  0xb7   :  { %1331 = vmatprep.mubr.bf16.mxu0 %v2953_v1  ;;  %1587 = vmatprep.mubr.bf16.mxu1 %v2955_v2 }
  0xbe   :  { %1332 = vmatmul.mubr.bf16.gmra.mxu0 %v2957_v3  ;;  %1588 = vmatmul.mubr.bf16.gmra.mxu1 %v2958_v4  ;;  %v3035_v3 = vld [vmem:[#allocation3 + $0x190] ss:$8 sps:$4 sm:$0xff]  }
  0xbf   :  { %1339 = vmatprep.mubr.bf16.mxu0 %v2959_v5  ;;  %1595 = vmatprep.mubr.bf16.mxu1 %v2961_v6  ;;  %v3036_v4 = vld [vmem:[#allocation3 + $0x390] ss:$8 sps:$4 sm:$0xff]  }
  0xc6   :  { %1340 = vmatmul.mubr.bf16.gmra.mxu0 %v2963_v7  ;;  %1596 = vmatmul.mubr.bf16.gmra.mxu1 %v2964_v8 }
  0xc7   :  { %1347 = vmatprep.mubr.bf16.mxu0 %v2965_v9  ;;  %1603 = vmatprep.mubr.bf16.mxu1 %v2967_v10  ;;  %v3037_v9 = vld [vmem:[#allocation3 + $0x1a4] ss:$8 sps:$4 sm:$0xff]  }
  0xc8   :  { %v3039_v10 = vld [vmem:[#allocation3 + $0x3a4] ss:$8 sps:$4 sm:$0xff]  }
  0xce   :  { %1348 = vmatmul.mubr.bf16.gmra.mxu0 %v2969_v11  ;;  %1604 = vmatmul.mubr.bf16.gmra.mxu1 %v2970_v12 }
  0xcf   :  { %1355 = vmatprep.mubr.bf16.mxu0 %v2971_v13  ;;  %1611 = vmatprep.mubr.bf16.mxu1 %v2973_v14 }
  0xd6   :  { %1356 = vmatmul.mubr.bf16.gmra.mxu0 %v2975_v15  ;;  %1612 = vmatmul.mubr.bf16.gmra.mxu1 %v2976_v16 }
  0xd7   :  { %1363 = vmatprep.mubr.bf16.mxu0 %v2977_v17  ;;  %1619 = vmatprep.mubr.bf16.mxu1 %v2979_v18 }
  0xde   :  { %1364 = vmatmul.mubr.bf16.gmra.mxu0 %v2981_v19  ;;  %1620 = vmatmul.mubr.bf16.gmra.mxu1 %v2982_v20 }
  0xdf   :  { %1371 = vmatprep.mubr.bf16.mxu0 %v2983_v21  ;;  %1627 = vmatprep.mubr.bf16.mxu1 %v2985_v22 }
  0xe6   :  { %1372 = vmatmul.mubr.bf16.gmra.mxu0 %v2987_v23  ;;  %1628 = vmatmul.mubr.bf16.gmra.mxu1 %v2988_v24 }
  0xe7   :  { %1379 = vmatprep.mubr.bf16.mxu0 %v2989_v25  ;;  %1635 = vmatprep.mubr.bf16.mxu1 %v2991_v26 }
  0xee   :  { %1380 = vmatmul.mubr.bf16.gmra.mxu0 %v2993_v27  ;;  %1636 = vmatmul.mubr.bf16.gmra.mxu1 %v2994_v28  ;;  %v3041_v27 = vld [vmem:[#allocation3 + $0x1a0] ss:$8 sps:$4 sm:$0xff]  }
  0xef   :  { %1387 = vmatprep.mubr.bf16.mxu0 %v2995_v29  ;;  %1643 = vmatprep.mubr.bf16.mxu1 %v2997_v30  ;;  %v3042_v28 = vld [vmem:[#allocation3 + $0x3a0] ss:$8 sps:$4 sm:$0xff]  }
  0xf6   :  { %1388 = vmatmul.mubr.bf16.gmra.mxu0 %v2999_v31  ;;  %1644 = vmatmul.mubr.bf16.gmra.mxu1 %v3000_v32 }
  0xf7   :  { %1395 = vmatprep.mubr.bf16.mxu0 %v3001_v33  ;;  %1651 = vmatprep.mubr.bf16.mxu1 %v3003_v34  ;;  %v3043_v33 = vld [vmem:[#allocation3 + $0x1b4] ss:$8 sps:$4 sm:$0xff]  }
  0xf8   :  { %v3045_v34 = vld [vmem:[#allocation3 + $0x3b4] ss:$8 sps:$4 sm:$0xff]  }
  0xfe   :  { %1396 = vmatmul.mubr.bf16.gmra.mxu0 %v3005_v35  ;;  %1652 = vmatmul.mubr.bf16.gmra.mxu1 %v3006_v36 }
  0xff   :  { %1403 = vmatprep.mubr.bf16.mxu0 %v3007_v37  ;;  %1659 = vmatprep.mubr.bf16.mxu1 %v3009_v38 }
 0x106   :  { %1404 = vmatmul.mubr.bf16.gmra.mxu0 %v3011_v39  ;;  %1660 = vmatmul.mubr.bf16.gmra.mxu1 %v3012_v40 }
 0x107   :  { %1411 = vmatprep.mubr.bf16.mxu0 %v3013_v41  ;;  %1667 = vmatprep.mubr.bf16.mxu1 %v3015_v42 }
 0x10e   :  { %1412 = vmatmul.mubr.bf16.gmra.mxu0 %v3017_v43  ;;  %1668 = vmatmul.mubr.bf16.gmra.mxu1 %v3018_v44 }
 0x10f   :  { %1419 = vmatprep.mubr.bf16.mxu0 %v3019_v45  ;;  %1675 = vmatprep.mubr.bf16.mxu1 %v3021_v46 }
 0x116   :  { %1420 = vmatmul.mubr.bf16.gmra.mxu0 %v3023_v47  ;;  %1676 = vmatmul.mubr.bf16.gmra.mxu1 %v3024_v48 }
 0x117   :  { %1427 = vmatprep.mubr.bf16.mxu0 %v3025_v49  ;;  %1683 = vmatprep.mubr.bf16.mxu1 %v3027_v50 }
 0x11e   :  { %v1237_v56 = vpop.f32.mrf.mxu0  ;;  %1428 = vmatmul.mubr.bf16.gmra.mxu0 %v3029_v51  ;;  %v1493_v58 = vpop.f32.mrf.mxu1  ;;  %1684 = vmatmul.mubr.bf16.gmra.mxu1 %v3030_v52  ;;  %v3047_v51 = vld [vmem:[#allocation3 + $0x1b0] ss:$8 sps:$4 sm:$0xff]  }
 0x11f   :  { %v2142_v59 = vmul.f32 %v3218_v55, %v1237_v56  ;;  %v2206_v60 = vmul.f32 %v3218_v55, %v1493_v58  ;;  %1435 = vmatprep.mubr.bf16.mxu0 %v3031_v53  ;;  %1691 = vmatprep.mubr.bf16.mxu1 %v3033_v54  ;;  %v3048_v52 = vld [vmem:[#allocation3 + $0x3b0] ss:$8 sps:$4 sm:$0xff]  }
 0x120   :  { %v1239_v61 = vpop.f32.mrf.mxu0  ;;  %v1495_v62 = vpop.f32.mrf.mxu1 }
 0x121   :  { %v2277_v63 = vadd.f32 %v3223_v57, %v2142_v59  ;;  %v2341_v0 = vadd.f32 %v3223_v57, %v2206_v60  ;;  %v3051_v59 = vld [vmem:[#allocation3 + $0x1c4] ss:$8 sps:$4 sm:$0xff]  }
 0x122   :  { %v1240_v1 = vpop.f32.mrf.mxu0  ;;  %v1496_v2 = vpop.f32.mrf.mxu1  ;;  %v3054_v60 = vld [vmem:[#allocation3 + $0x3c4] ss:$8 sps:$4 sm:$0xff]  }
 0x123   :  { %v2405_v5 = vmax.f32 %v2277_v63, 0.0  ;;  %v2469_v6 = vmax.f32 %v2341_v0, 0.0  ;;  %v2143_v7 = vmul.f32 %v3218_v55, %v1240_v1  ;;  %v2207_v8 = vmul.f32 %v3218_v55, %v1496_v2 }
 0x124   :  { %v1242_v11 = vpop.f32.mrf.mxu0  ;;  %v1498_v12 = vpop.f32.mrf.mxu1 }
 0x125   :  { %2533 = vst [vmem:[#allocation8] sm:$0xff] %v2405_v5  ;;  %2597 = vst [vmem:[#allocation8 + $0x200] sm:$0xff] %v2469_v6  ;;  %v2278_v13 = vadd.f32 %v3223_v57, %v2143_v7  ;;  %v2342_v14 = vadd.f32 %v3223_v57, %v2207_v8 }
 0x126   :  { %v1245_v15 = vpop.f32.mrf.mxu0  ;;  %1436 = vmatmul.mubr.bf16.gmra.mxu0 %v3035_v3  ;;  %v1501_v16 = vpop.f32.mrf.mxu1  ;;  %1692 = vmatmul.mubr.bf16.gmra.mxu1 %v3036_v4 }
 0x127   :  { %v2406_v17 = vmax.f32 %v2278_v13, 0.0  ;;  %v2470_v18 = vmax.f32 %v2342_v14, 0.0  ;;  %v2144_v19 = vmul.f32 %v3218_v55, %v1245_v15  ;;  %v2208_v20 = vmul.f32 %v3218_v55, %v1501_v16  ;;  %1443 = vmatprep.mubr.bf16.mxu0 %v3037_v9  ;;  %1699 = vmatprep.mubr.bf16.mxu1 %v3039_v10  ;;  %v3049_v13 = vld [vmem:[#allocation3 + $0x1c0] ss:$8 sps:$4 sm:$0xff]  }
 0x128   :  { %v1247_v21 = vpop.f32.mrf.mxu0  ;;  %v1503_v22 = vpop.f32.mrf.mxu1  ;;  %v3052_v14 = vld [vmem:[#allocation3 + $0x3c0] ss:$8 sps:$4 sm:$0xff]  }
 0x129   :  { %2534 = vst [vmem:[#allocation8 + $0x8] sm:$0xff] %v2406_v17  ;;  %2598 = vst [vmem:[#allocation8 + $0x208] sm:$0xff] %v2470_v18  ;;  %v2279_v23 = vadd.f32 %v3223_v57, %v2144_v19  ;;  %v2343_v24 = vadd.f32 %v3223_v57, %v2208_v20  ;;  %v3057_v19 = vld [vmem:[#allocation3 + $0x1d4] ss:$8 sps:$4 sm:$0xff]  }
 0x12a   :  { %v1248_v25 = vpop.f32.mrf.mxu0  ;;  %v1504_v26 = vpop.f32.mrf.mxu1  ;;  %v3060_v20 = vld [vmem:[#allocation3 + $0x3d4] ss:$8 sps:$4 sm:$0xff]  }
 0x12b   :  { %v2407_v29 = vmax.f32 %v2279_v23, 0.0  ;;  %v2471_v30 = vmax.f32 %v2343_v24, 0.0  ;;  %v2145_v31 = vmul.f32 %v3218_v55, %v1248_v25  ;;  %v2209_v32 = vmul.f32 %v3218_v55, %v1504_v26 }
 0x12c   :  { %v1250_v35 = vpop.f32.mrf.mxu0  ;;  %v1506_v36 = vpop.f32.mrf.mxu1 }
 0x12d   :  { %2535 = vst [vmem:[#allocation8 + $0x10] sm:$0xff] %v2407_v29  ;;  %2599 = vst [vmem:[#allocation8 + $0x210] sm:$0xff] %v2471_v30  ;;  %v2280_v37 = vadd.f32 %v3223_v57, %v2145_v31  ;;  %v2344_v38 = vadd.f32 %v3223_v57, %v2209_v32 }
 0x12e   :  { %v1253_v39 = vpop.f32.mrf.mxu0  ;;  %1444 = vmatmul.mubr.bf16.gmra.mxu0 %v3041_v27  ;;  %v1509_v40 = vpop.f32.mrf.mxu1  ;;  %1700 = vmatmul.mubr.bf16.gmra.mxu1 %v3042_v28 }
 0x12f   :  { %v2408_v41 = vmax.f32 %v2280_v37, 0.0  ;;  %v2472_v42 = vmax.f32 %v2344_v38, 0.0  ;;  %v2146_v43 = vmul.f32 %v3218_v55, %v1253_v39  ;;  %v2210_v44 = vmul.f32 %v3218_v55, %v1509_v40  ;;  %1451 = vmatprep.mubr.bf16.mxu0 %v3043_v33  ;;  %1707 = vmatprep.mubr.bf16.mxu1 %v3045_v34  ;;  %v3055_v37 = vld [vmem:[#allocation3 + $0x1d0] ss:$8 sps:$4 sm:$0xff]  }
 0x130   :  { %v1255_v45 = vpop.f32.mrf.mxu0  ;;  %v1511_v46 = vpop.f32.mrf.mxu1  ;;  %v3058_v38 = vld [vmem:[#allocation3 + $0x3d0] ss:$8 sps:$4 sm:$0xff]  }
 0x131   :  { %2536 = vst [vmem:[#allocation8 + $0x18] sm:$0xff] %v2408_v41  ;;  %2600 = vst [vmem:[#allocation8 + $0x218] sm:$0xff] %v2472_v42  ;;  %v2281_v47 = vadd.f32 %v3223_v57, %v2146_v43  ;;  %v2345_v48 = vadd.f32 %v3223_v57, %v2210_v44  ;;  %v3063_v43 = vld [vmem:[#allocation3 + $0x1e4] ss:$8 sps:$4 sm:$0xff]  }
 0x132   :  { %v1256_v49 = vpop.f32.mrf.mxu0  ;;  %v1512_v50 = vpop.f32.mrf.mxu1  ;;  %v3066_v44 = vld [vmem:[#allocation3 + $0x3e4] ss:$8 sps:$4 sm:$0xff]  }
 0x133   :  { %v2409_v53 = vmax.f32 %v2281_v47, 0.0  ;;  %v2473_v54 = vmax.f32 %v2345_v48, 0.0  ;;  %v2147_v56 = vmul.f32 %v3218_v55, %v1256_v49  ;;  %v2211_v58 = vmul.f32 %v3218_v55, %v1512_v50 }
 0x134   :  { %v1258_v61 = vpop.f32.mrf.mxu0  ;;  %v1514_v62 = vpop.f32.mrf.mxu1 }
 0x135   :  { %2537 = vst [vmem:[#allocation8 + $0x20] sm:$0xff] %v2409_v53  ;;  %2601 = vst [vmem:[#allocation8 + $0x220] sm:$0xff] %v2473_v54  ;;  %v2282_v63 = vadd.f32 %v3223_v57, %v2147_v56  ;;  %v2346_v0 = vadd.f32 %v3223_v57, %v2211_v58 }
 0x136   :  { %v1261_v1 = vpop.f32.mrf.mxu0  ;;  %1452 = vmatmul.mubr.bf16.gmra.mxu0 %v3047_v51  ;;  %v1517_v2 = vpop.f32.mrf.mxu1  ;;  %1708 = vmatmul.mubr.bf16.gmra.mxu1 %v3048_v52 }
 0x137   :  { %v2410_v3 = vmax.f32 %v2282_v63, 0.0  ;;  %v2474_v4 = vmax.f32 %v2346_v0, 0.0  ;;  %v2148_v5 = vmul.f32 %v3218_v55, %v1261_v1  ;;  %v2212_v6 = vmul.f32 %v3218_v55, %v1517_v2  ;;  %1459 = vmatprep.mubr.bf16.mxu0 %v3051_v59  ;;  %1715 = vmatprep.mubr.bf16.mxu1 %v3054_v60  ;;  %v3061_v63 = vld [vmem:[#allocation3 + $0x1e0] ss:$8 sps:$4 sm:$0xff]  }
 0x138   :  { %v1263_v7 = vpop.f32.mrf.mxu0  ;;  %v1519_v8 = vpop.f32.mrf.mxu1  ;;  %v3064_v0 = vld [vmem:[#allocation3 + $0x3e0] ss:$8 sps:$4 sm:$0xff]  }
 0x139   :  { %2538 = vst [vmem:[#allocation8 + $0x28] sm:$0xff] %v2410_v3  ;;  %2602 = vst [vmem:[#allocation8 + $0x228] sm:$0xff] %v2474_v4  ;;  %v2283_v9 = vadd.f32 %v3223_v57, %v2148_v5  ;;  %v2347_v10 = vadd.f32 %v3223_v57, %v2212_v6  ;;  %v3069_v5 = vld [vmem:[#allocation3 + $0x1f4] ss:$8 sps:$4 sm:$0xff]  }
 0x13a   :  { %v1264_v11 = vpop.f32.mrf.mxu0  ;;  %v1520_v12 = vpop.f32.mrf.mxu1  ;;  %v3072_v6 = vld [vmem:[#allocation3 + $0x3f4] ss:$8 sps:$4 sm:$0xff]  }
 0x13b   :  { %v2411_v15 = vmax.f32 %v2283_v9, 0.0  ;;  %v2475_v16 = vmax.f32 %v2347_v10, 0.0  ;;  %v2149_v17 = vmul.f32 %v3218_v55, %v1264_v11  ;;  %v2213_v18 = vmul.f32 %v3218_v55, %v1520_v12 }
 0x13c   :  { %v1266_v21 = vpop.f32.mrf.mxu0  ;;  %v1522_v22 = vpop.f32.mrf.mxu1 }
 0x13d   :  { %2539 = vst [vmem:[#allocation8 + $0x30] sm:$0xff] %v2411_v15  ;;  %2603 = vst [vmem:[#allocation8 + $0x230] sm:$0xff] %v2475_v16  ;;  %v2284_v23 = vadd.f32 %v3223_v57, %v2149_v17  ;;  %v2348_v24 = vadd.f32 %v3223_v57, %v2213_v18 }
 0x13e   :  { %v1269_v25 = vpop.f32.mrf.mxu0  ;;  %1460 = vmatmul.mubr.bf16.gmra.mxu0 %v3049_v13  ;;  %v1525_v26 = vpop.f32.mrf.mxu1  ;;  %1716 = vmatmul.mubr.bf16.gmra.mxu1 %v3052_v14 }
 0x13f   :  { %v2412_v27 = vmax.f32 %v2284_v23, 0.0  ;;  %v2476_v28 = vmax.f32 %v2348_v24, 0.0  ;;  %v2150_v29 = vmul.f32 %v3218_v55, %v1269_v25  ;;  %v2214_v30 = vmul.f32 %v3218_v55, %v1525_v26  ;;  %1467 = vmatprep.mubr.bf16.mxu0 %v3057_v19  ;;  %1723 = vmatprep.mubr.bf16.mxu1 %v3060_v20  ;;  %v3067_v23 = vld [vmem:[#allocation3 + $0x1f0] ss:$8 sps:$4 sm:$0xff]  }
 0x140   :  { %v1271_v31 = vpop.f32.mrf.mxu0  ;;  %v1527_v32 = vpop.f32.mrf.mxu1  ;;  %v3070_v24 = vld [vmem:[#allocation3 + $0x3f0] ss:$8 sps:$4 sm:$0xff]  }
 0x141   :  { %2540 = vst [vmem:[#allocation8 + $0x38] sm:$0xff] %v2412_v27  ;;  %2604 = vst [vmem:[#allocation8 + $0x238] sm:$0xff] %v2476_v28  ;;  %v2285_v33 = vadd.f32 %v3223_v57, %v2150_v29  ;;  %v2349_v34 = vadd.f32 %v3223_v57, %v2214_v30 }
 0x142   :  { %v1272_v35 = vpop.f32.mrf.mxu0  ;;  %v1528_v36 = vpop.f32.mrf.mxu1 }
 0x143   :  { %v2413_v39 = vmax.f32 %v2285_v33, 0.0  ;;  %v2477_v40 = vmax.f32 %v2349_v34, 0.0  ;;  %v2151_v41 = vmul.f32 %v3218_v55, %v1272_v35  ;;  %v2215_v42 = vmul.f32 %v3218_v55, %v1528_v36 }
 0x144   :  { %v1274_v45 = vpop.f32.mrf.mxu0  ;;  %v1530_v46 = vpop.f32.mrf.mxu1 }
 0x145   :  { %2541 = vst [vmem:[#allocation8 + $0x40] sm:$0xff] %v2413_v39  ;;  %2605 = vst [vmem:[#allocation8 + $0x240] sm:$0xff] %v2477_v40  ;;  %v2286_v47 = vadd.f32 %v3223_v57, %v2151_v41  ;;  %v2350_v48 = vadd.f32 %v3223_v57, %v2215_v42 }
 0x146   :  { %v1277_v49 = vpop.f32.mrf.mxu0  ;;  %1468 = vmatmul.mubr.bf16.gmra.mxu0 %v3055_v37  ;;  %v1533_v50 = vpop.f32.mrf.mxu1  ;;  %1724 = vmatmul.mubr.bf16.gmra.mxu1 %v3058_v38 }
 0x147   :  { %v2414_v51 = vmax.f32 %v2286_v47, 0.0  ;;  %v2478_v52 = vmax.f32 %v2350_v48, 0.0  ;;  %v2152_v53 = vmul.f32 %v3218_v55, %v1277_v49  ;;  %v2216_v54 = vmul.f32 %v3218_v55, %v1533_v50  ;;  %1475 = vmatprep.mubr.bf16.mxu0 %v3063_v43  ;;  %1731 = vmatprep.mubr.bf16.mxu1 %v3066_v44 }
 0x148   :  { %v1279_v56 = vpop.f32.mrf.mxu0  ;;  %v1535_v58 = vpop.f32.mrf.mxu1 }
 0x149   :  { %2542 = vst [vmem:[#allocation8 + $0x48] sm:$0xff] %v2414_v51  ;;  %2606 = vst [vmem:[#allocation8 + $0x248] sm:$0xff] %v2478_v52  ;;  %v2287_v59 = vadd.f32 %v3223_v57, %v2152_v53  ;;  %v2351_v60 = vadd.f32 %v3223_v57, %v2216_v54 }
 0x14a   :  { %v1280_v61 = vpop.f32.mrf.mxu0  ;;  %v1536_v62 = vpop.f32.mrf.mxu1 }
 0x14b   :  { %v2415_v1 = vmax.f32 %v2287_v59, 0.0  ;;  %v2479_v2 = vmax.f32 %v2351_v60, 0.0  ;;  %v2153_v3 = vmul.f32 %v3218_v55, %v1280_v61  ;;  %v2217_v4 = vmul.f32 %v3218_v55, %v1536_v62 }
 0x14c   :  { %v1282_v7 = vpop.f32.mrf.mxu0  ;;  %v1538_v8 = vpop.f32.mrf.mxu1 }
 0x14d   :  { %2543 = vst [vmem:[#allocation8 + $0x50] sm:$0xff] %v2415_v1  ;;  %2607 = vst [vmem:[#allocation8 + $0x250] sm:$0xff] %v2479_v2  ;;  %v2288_v9 = vadd.f32 %v3223_v57, %v2153_v3  ;;  %v2352_v10 = vadd.f32 %v3223_v57, %v2217_v4 }
 0x14e   :  { %v1285_v11 = vpop.f32.mrf.mxu0  ;;  %1476 = vmatmul.mubr.bf16.gmra.mxu0 %v3061_v63  ;;  %v1541_v12 = vpop.f32.mrf.mxu1  ;;  %1732 = vmatmul.mubr.bf16.gmra.mxu1 %v3064_v0 }
 0x14f   :  { %v2416_v13 = vmax.f32 %v2288_v9, 0.0  ;;  %v2480_v14 = vmax.f32 %v2352_v10, 0.0  ;;  %v2154_v15 = vmul.f32 %v3218_v55, %v1285_v11  ;;  %v2218_v16 = vmul.f32 %v3218_v55, %v1541_v12  ;;  %1483 = vmatprep.mubr.bf16.mxu0 %v3069_v5  ;;  %1739 = vmatprep.mubr.bf16.mxu1 %v3072_v6 }
 0x150   :  { %v1287_v17 = vpop.f32.mrf.mxu0  ;;  %v1543_v18 = vpop.f32.mrf.mxu1 }
 0x151   :  { %2544 = vst [vmem:[#allocation8 + $0x58] sm:$0xff] %v2416_v13  ;;  %2608 = vst [vmem:[#allocation8 + $0x258] sm:$0xff] %v2480_v14  ;;  %v2289_v19 = vadd.f32 %v3223_v57, %v2154_v15  ;;  %v2353_v20 = vadd.f32 %v3223_v57, %v2218_v16 }
 0x152   :  { %v1288_v21 = vpop.f32.mrf.mxu0  ;;  %v1544_v22 = vpop.f32.mrf.mxu1 }
 0x153   :  { %v2417_v25 = vmax.f32 %v2289_v19, 0.0  ;;  %v2481_v26 = vmax.f32 %v2353_v20, 0.0  ;;  %v2155_v27 = vmul.f32 %v3218_v55, %v1288_v21  ;;  %v2219_v28 = vmul.f32 %v3218_v55, %v1544_v22 }
 0x154   :  { %v1290_v29 = vpop.f32.mrf.mxu0  ;;  %v1546_v30 = vpop.f32.mrf.mxu1 }
 0x155   :  { %2545 = vst [vmem:[#allocation8 + $0x60] sm:$0xff] %v2417_v25  ;;  %2609 = vst [vmem:[#allocation8 + $0x260] sm:$0xff] %v2481_v26  ;;  %v2290_v31 = vadd.f32 %v3223_v57, %v2155_v27  ;;  %v2354_v32 = vadd.f32 %v3223_v57, %v2219_v28 }
 0x156   :  { %v1293_v33 = vpop.f32.mrf.mxu0  ;;  %1484 = vmatmul.mubr.bf16.gmra.mxu0 %v3067_v23  ;;  %v1549_v34 = vpop.f32.mrf.mxu1  ;;  %1740 = vmatmul.mubr.bf16.gmra.mxu1 %v3070_v24 }
 0x157   :  { %v2418_v35 = vmax.f32 %v2290_v31, 0.0  ;;  %v2482_v36 = vmax.f32 %v2354_v32, 0.0  ;;  %v2156_v37 = vmul.f32 %v3218_v55, %v1293_v33  ;;  %v2220_v38 = vmul.f32 %v3218_v55, %v1549_v34 }
 0x158   :  { %v1295_v39 = vpop.f32.mrf.mxu0  ;;  %v1551_v40 = vpop.f32.mrf.mxu1 }
 0x159   :  { %2546 = vst [vmem:[#allocation8 + $0x68] sm:$0xff] %v2418_v35  ;;  %2610 = vst [vmem:[#allocation8 + $0x268] sm:$0xff] %v2482_v36  ;;  %v2291_v41 = vadd.f32 %v3223_v57, %v2156_v37  ;;  %v2355_v42 = vadd.f32 %v3223_v57, %v2220_v38 }
 0x15a   :  { %v1296_v43 = vpop.f32.mrf.mxu0  ;;  %v1552_v44 = vpop.f32.mrf.mxu1 }
 0x15b   :  { %v2419_v45 = vmax.f32 %v2291_v41, 0.0  ;;  %v2483_v46 = vmax.f32 %v2355_v42, 0.0  ;;  %v2157_v47 = vmul.f32 %v3218_v55, %v1296_v43  ;;  %v2221_v48 = vmul.f32 %v3218_v55, %v1552_v44 }
 0x15c   :  { %v1298_v49 = vpop.f32.mrf.mxu0  ;;  %v1554_v50 = vpop.f32.mrf.mxu1 }
 0x15d   :  { %2547 = vst [vmem:[#allocation8 + $0x70] sm:$0xff] %v2419_v45  ;;  %2611 = vst [vmem:[#allocation8 + $0x270] sm:$0xff] %v2483_v46  ;;  %v2292_v51 = vadd.f32 %v3223_v57, %v2157_v47  ;;  %v2356_v52 = vadd.f32 %v3223_v57, %v2221_v48 }
 0x15e   :  { %v1301_v53 = vpop.f32.mrf.mxu0  ;;  %v1557_v54 = vpop.f32.mrf.mxu1 }
 0x15f   :  { %v2420_v56 = vmax.f32 %v2292_v51, 0.0  ;;  %v2484_v58 = vmax.f32 %v2356_v52, 0.0  ;;  %v2158_v59 = vmul.f32 %v3218_v55, %v1301_v53  ;;  %v2222_v60 = vmul.f32 %v3218_v55, %v1557_v54 }
 0x160   :  { %v1303_v61 = vpop.f32.mrf.mxu0  ;;  %v1559_v62 = vpop.f32.mrf.mxu1 }
 0x161   :  { %2548 = vst [vmem:[#allocation8 + $0x78] sm:$0xff] %v2420_v56  ;;  %2612 = vst [vmem:[#allocation8 + $0x278] sm:$0xff] %v2484_v58  ;;  %v2293_v63 = vadd.f32 %v3223_v57, %v2158_v59  ;;  %v2357_v0 = vadd.f32 %v3223_v57, %v2222_v60 }
 0x162   :  { %v1304_v1 = vpop.f32.mrf.mxu0  ;;  %v1560_v2 = vpop.f32.mrf.mxu1 }
 0x163   :  { %v2421_v3 = vmax.f32 %v2293_v63, 0.0  ;;  %v2485_v4 = vmax.f32 %v2357_v0, 0.0  ;;  %v2159_v5 = vmul.f32 %v3218_v55, %v1304_v1  ;;  %v2223_v6 = vmul.f32 %v3218_v55, %v1560_v2 }
 0x164   :  { %v1306_v7 = vpop.f32.mrf.mxu0  ;;  %v1562_v8 = vpop.f32.mrf.mxu1 }
 0x165   :  { %2549 = vst [vmem:[#allocation8 + $0x80] sm:$0xff] %v2421_v3  ;;  %2613 = vst [vmem:[#allocation8 + $0x280] sm:$0xff] %v2485_v4  ;;  %v2294_v9 = vadd.f32 %v3223_v57, %v2159_v5  ;;  %v2358_v10 = vadd.f32 %v3223_v57, %v2223_v6 }
 0x166   :  { %v1309_v11 = vpop.f32.mrf.mxu0  ;;  %v1565_v12 = vpop.f32.mrf.mxu1 }
 0x167   :  { %v2422_v13 = vmax.f32 %v2294_v9, 0.0  ;;  %v2486_v14 = vmax.f32 %v2358_v10, 0.0  ;;  %v2160_v15 = vmul.f32 %v3218_v55, %v1309_v11  ;;  %v2224_v16 = vmul.f32 %v3218_v55, %v1565_v12 }
 0x168   :  { %v1311_v17 = vpop.f32.mrf.mxu0  ;;  %v1567_v18 = vpop.f32.mrf.mxu1 }
 0x169   :  { %2550 = vst [vmem:[#allocation8 + $0x88] sm:$0xff] %v2422_v13  ;;  %2614 = vst [vmem:[#allocation8 + $0x288] sm:$0xff] %v2486_v14  ;;  %v2295_v19 = vadd.f32 %v3223_v57, %v2160_v15  ;;  %v2359_v20 = vadd.f32 %v3223_v57, %v2224_v16 }
 0x16a   :  { %v1312_v21 = vpop.f32.mrf.mxu0  ;;  %v1568_v22 = vpop.f32.mrf.mxu1 }
 0x16b   :  { %v2423_v23 = vmax.f32 %v2295_v19, 0.0  ;;  %v2487_v24 = vmax.f32 %v2359_v20, 0.0  ;;  %v2161_v25 = vmul.f32 %v3218_v55, %v1312_v21  ;;  %v2225_v26 = vmul.f32 %v3218_v55, %v1568_v22 }
 0x16c   :  { %v1314_v27 = vpop.f32.mrf.mxu0  ;;  %v1570_v28 = vpop.f32.mrf.mxu1 }
 0x16d   :  { %2551 = vst [vmem:[#allocation8 + $0x90] sm:$0xff] %v2423_v23  ;;  %2615 = vst [vmem:[#allocation8 + $0x290] sm:$0xff] %v2487_v24  ;;  %v2296_v29 = vadd.f32 %v3223_v57, %v2161_v25  ;;  %v2360_v30 = vadd.f32 %v3223_v57, %v2225_v26 }
 0x16e   :  { %v1317_v31 = vpop.f32.mrf.mxu0  ;;  %v1573_v32 = vpop.f32.mrf.mxu1 }
 0x16f   :  { %v2424_v33 = vmax.f32 %v2296_v29, 0.0  ;;  %v2488_v34 = vmax.f32 %v2360_v30, 0.0  ;;  %v2162_v35 = vmul.f32 %v3218_v55, %v1317_v31  ;;  %v2226_v36 = vmul.f32 %v3218_v55, %v1573_v32 }
 0x170   :  { %v1319_v37 = vpop.f32.mrf.mxu0  ;;  %v1575_v38 = vpop.f32.mrf.mxu1 }
 0x171   :  { %2552 = vst [vmem:[#allocation8 + $0x98] sm:$0xff] %v2424_v33  ;;  %2616 = vst [vmem:[#allocation8 + $0x298] sm:$0xff] %v2488_v34  ;;  %v2297_v39 = vadd.f32 %v3223_v57, %v2162_v35  ;;  %v2361_v40 = vadd.f32 %v3223_v57, %v2226_v36 }
 0x172   :  { %v1320_v41 = vpop.f32.mrf.mxu0  ;;  %v1576_v42 = vpop.f32.mrf.mxu1 }
 0x173   :  { %v2425_v43 = vmax.f32 %v2297_v39, 0.0  ;;  %v2489_v44 = vmax.f32 %v2361_v40, 0.0  ;;  %v2163_v45 = vmul.f32 %v3218_v55, %v1320_v41  ;;  %v2227_v46 = vmul.f32 %v3218_v55, %v1576_v42 }
 0x174   :  { %v1322_v47 = vpop.f32.mrf.mxu0  ;;  %v1578_v48 = vpop.f32.mrf.mxu1 }
 0x175   :  { %2553 = vst [vmem:[#allocation8 + $0xa0] sm:$0xff] %v2425_v43  ;;  %2617 = vst [vmem:[#allocation8 + $0x2a0] sm:$0xff] %v2489_v44  ;;  %v2298_v49 = vadd.f32 %v3223_v57, %v2163_v45  ;;  %v2362_v50 = vadd.f32 %v3223_v57, %v2227_v46 }
 0x176   :  { %v1325_v51 = vpop.f32.mrf.mxu0  ;;  %v1581_v52 = vpop.f32.mrf.mxu1 }
 0x177   :  { %v2426_v53 = vmax.f32 %v2298_v49, 0.0  ;;  %v2490_v54 = vmax.f32 %v2362_v50, 0.0  ;;  %v2164_v56 = vmul.f32 %v3218_v55, %v1325_v51  ;;  %v2228_v58 = vmul.f32 %v3218_v55, %v1581_v52 }
 0x178   :  { %v1327_v59 = vpop.f32.mrf.mxu0  ;;  %v1583_v60 = vpop.f32.mrf.mxu1 }
 0x179   :  { %2554 = vst [vmem:[#allocation8 + $0xa8] sm:$0xff] %v2426_v53  ;;  %2618 = vst [vmem:[#allocation8 + $0x2a8] sm:$0xff] %v2490_v54  ;;  %v2299_v61 = vadd.f32 %v3223_v57, %v2164_v56  ;;  %v2363_v62 = vadd.f32 %v3223_v57, %v2228_v58 }
 0x17a   :  { %v1328_v63 = vpop.f32.mrf.mxu0  ;;  %v1584_v0 = vpop.f32.mrf.mxu1 }
 0x17b   :  { %v2427_v1 = vmax.f32 %v2299_v61, 0.0  ;;  %v2491_v2 = vmax.f32 %v2363_v62, 0.0  ;;  %v2165_v3 = vmul.f32 %v3218_v55, %v1328_v63  ;;  %v2229_v4 = vmul.f32 %v3218_v55, %v1584_v0 }
 0x17c   :  { %v1330_v5 = vpop.f32.mrf.mxu0  ;;  %v1586_v6 = vpop.f32.mrf.mxu1 }
 0x17d   :  { %2555 = vst [vmem:[#allocation8 + $0xb0] sm:$0xff] %v2427_v1  ;;  %2619 = vst [vmem:[#allocation8 + $0x2b0] sm:$0xff] %v2491_v2  ;;  %v2300_v7 = vadd.f32 %v3223_v57, %v2165_v3  ;;  %v2364_v8 = vadd.f32 %v3223_v57, %v2229_v4 }
 0x17e   :  { %v1333_v9 = vpop.f32.mrf.mxu0  ;;  %v1589_v10 = vpop.f32.mrf.mxu1 }
 0x17f   :  { %v2428_v11 = vmax.f32 %v2300_v7, 0.0  ;;  %v2492_v12 = vmax.f32 %v2364_v8, 0.0  ;;  %v2166_v13 = vmul.f32 %v3218_v55, %v1333_v9  ;;  %v2230_v14 = vmul.f32 %v3218_v55, %v1589_v10 }
 0x180   :  { %v1335_v15 = vpop.f32.mrf.mxu0  ;;  %v1591_v16 = vpop.f32.mrf.mxu1 }
 0x181   :  { %2556 = vst [vmem:[#allocation8 + $0xb8] sm:$0xff] %v2428_v11  ;;  %2620 = vst [vmem:[#allocation8 + $0x2b8] sm:$0xff] %v2492_v12  ;;  %v2301_v17 = vadd.f32 %v3223_v57, %v2166_v13  ;;  %v2365_v18 = vadd.f32 %v3223_v57, %v2230_v14 }
 0x182   :  { %v1336_v19 = vpop.f32.mrf.mxu0  ;;  %v1592_v20 = vpop.f32.mrf.mxu1 }
 0x183   :  { %v2429_v21 = vmax.f32 %v2301_v17, 0.0  ;;  %v2493_v22 = vmax.f32 %v2365_v18, 0.0  ;;  %v2167_v23 = vmul.f32 %v3218_v55, %v1336_v19  ;;  %v2231_v24 = vmul.f32 %v3218_v55, %v1592_v20 }
 0x184   :  { %v1338_v25 = vpop.f32.mrf.mxu0  ;;  %v1594_v26 = vpop.f32.mrf.mxu1 }
 0x185   :  { %2557 = vst [vmem:[#allocation8 + $0xc0] sm:$0xff] %v2429_v21  ;;  %2621 = vst [vmem:[#allocation8 + $0x2c0] sm:$0xff] %v2493_v22  ;;  %v2302_v27 = vadd.f32 %v3223_v57, %v2167_v23  ;;  %v2366_v28 = vadd.f32 %v3223_v57, %v2231_v24 }
 0x186   :  { %v1341_v29 = vpop.f32.mrf.mxu0  ;;  %v1597_v30 = vpop.f32.mrf.mxu1 }
 0x187   :  { %v2430_v31 = vmax.f32 %v2302_v27, 0.0  ;;  %v2494_v32 = vmax.f32 %v2366_v28, 0.0  ;;  %v2168_v33 = vmul.f32 %v3218_v55, %v1341_v29  ;;  %v2232_v34 = vmul.f32 %v3218_v55, %v1597_v30 }
 0x188   :  { %v1343_v35 = vpop.f32.mrf.mxu0  ;;  %v1599_v36 = vpop.f32.mrf.mxu1 }
 0x189   :  { %2558 = vst [vmem:[#allocation8 + $0xc8] sm:$0xff] %v2430_v31  ;;  %2622 = vst [vmem:[#allocation8 + $0x2c8] sm:$0xff] %v2494_v32  ;;  %v2303_v37 = vadd.f32 %v3223_v57, %v2168_v33  ;;  %v2367_v38 = vadd.f32 %v3223_v57, %v2232_v34 }
 0x18a   :  { %v1344_v39 = vpop.f32.mrf.mxu0  ;;  %v1600_v40 = vpop.f32.mrf.mxu1 }
 0x18b   :  { %v2431_v41 = vmax.f32 %v2303_v37, 0.0  ;;  %v2495_v42 = vmax.f32 %v2367_v38, 0.0  ;;  %v2169_v43 = vmul.f32 %v3218_v55, %v1344_v39  ;;  %v2233_v44 = vmul.f32 %v3218_v55, %v1600_v40 }
 0x18c   :  { %v1346_v45 = vpop.f32.mrf.mxu0  ;;  %v1602_v46 = vpop.f32.mrf.mxu1 }
 0x18d   :  { %2559 = vst [vmem:[#allocation8 + $0xd0] sm:$0xff] %v2431_v41  ;;  %2623 = vst [vmem:[#allocation8 + $0x2d0] sm:$0xff] %v2495_v42  ;;  %v2304_v47 = vadd.f32 %v3223_v57, %v2169_v43  ;;  %v2368_v48 = vadd.f32 %v3223_v57, %v2233_v44 }
 0x18e   :  { %v1349_v49 = vpop.f32.mrf.mxu0  ;;  %v1605_v50 = vpop.f32.mrf.mxu1 }
 0x18f   :  { %v2432_v51 = vmax.f32 %v2304_v47, 0.0  ;;  %v2496_v52 = vmax.f32 %v2368_v48, 0.0  ;;  %v2170_v53 = vmul.f32 %v3218_v55, %v1349_v49  ;;  %v2234_v54 = vmul.f32 %v3218_v55, %v1605_v50 }
 0x190   :  { %v1351_v56 = vpop.f32.mrf.mxu0  ;;  %v1607_v58 = vpop.f32.mrf.mxu1 }
 0x191   :  { %2560 = vst [vmem:[#allocation8 + $0xd8] sm:$0xff] %v2432_v51  ;;  %2624 = vst [vmem:[#allocation8 + $0x2d8] sm:$0xff] %v2496_v52  ;;  %v2305_v59 = vadd.f32 %v3223_v57, %v2170_v53  ;;  %v2369_v60 = vadd.f32 %v3223_v57, %v2234_v54 }
 0x192   :  { %v1352_v61 = vpop.f32.mrf.mxu0  ;;  %v1608_v62 = vpop.f32.mrf.mxu1 }
 0x193   :  { %v2433_v63 = vmax.f32 %v2305_v59, 0.0  ;;  %v2497_v0 = vmax.f32 %v2369_v60, 0.0  ;;  %v2171_v1 = vmul.f32 %v3218_v55, %v1352_v61  ;;  %v2235_v2 = vmul.f32 %v3218_v55, %v1608_v62 }
 0x194   :  { %v1354_v3 = vpop.f32.mrf.mxu0  ;;  %v1610_v4 = vpop.f32.mrf.mxu1 }
 0x195   :  { %2561 = vst [vmem:[#allocation8 + $0xe0] sm:$0xff] %v2433_v63  ;;  %2625 = vst [vmem:[#allocation8 + $0x2e0] sm:$0xff] %v2497_v0  ;;  %v2306_v5 = vadd.f32 %v3223_v57, %v2171_v1  ;;  %v2370_v6 = vadd.f32 %v3223_v57, %v2235_v2 }
 0x196   :  { %v1357_v7 = vpop.f32.mrf.mxu0  ;;  %v1613_v8 = vpop.f32.mrf.mxu1 }
 0x197   :  { %v2434_v9 = vmax.f32 %v2306_v5, 0.0  ;;  %v2498_v10 = vmax.f32 %v2370_v6, 0.0  ;;  %v2172_v11 = vmul.f32 %v3218_v55, %v1357_v7  ;;  %v2236_v12 = vmul.f32 %v3218_v55, %v1613_v8 }
 0x198   :  { %v1359_v13 = vpop.f32.mrf.mxu0  ;;  %v1615_v14 = vpop.f32.mrf.mxu1 }
 0x199   :  { %2562 = vst [vmem:[#allocation8 + $0xe8] sm:$0xff] %v2434_v9  ;;  %2626 = vst [vmem:[#allocation8 + $0x2e8] sm:$0xff] %v2498_v10  ;;  %v2307_v15 = vadd.f32 %v3223_v57, %v2172_v11  ;;  %v2371_v16 = vadd.f32 %v3223_v57, %v2236_v12 }
 0x19a   :  { %v1360_v17 = vpop.f32.mrf.mxu0  ;;  %v1616_v18 = vpop.f32.mrf.mxu1 }
 0x19b   :  { %v2435_v19 = vmax.f32 %v2307_v15, 0.0  ;;  %v2499_v20 = vmax.f32 %v2371_v16, 0.0  ;;  %v2173_v21 = vmul.f32 %v3218_v55, %v1360_v17  ;;  %v2237_v22 = vmul.f32 %v3218_v55, %v1616_v18 }
 0x19c   :  { %v1362_v23 = vpop.f32.mrf.mxu0  ;;  %v1618_v24 = vpop.f32.mrf.mxu1 }
 0x19d   :  { %2563 = vst [vmem:[#allocation8 + $0xf0] sm:$0xff] %v2435_v19  ;;  %2627 = vst [vmem:[#allocation8 + $0x2f0] sm:$0xff] %v2499_v20  ;;  %v2308_v25 = vadd.f32 %v3223_v57, %v2173_v21  ;;  %v2372_v26 = vadd.f32 %v3223_v57, %v2237_v22 }
 0x19e   :  { %v1365_v27 = vpop.f32.mrf.mxu0  ;;  %v1621_v28 = vpop.f32.mrf.mxu1 }
 0x19f   :  { %v2436_v29 = vmax.f32 %v2308_v25, 0.0  ;;  %v2500_v30 = vmax.f32 %v2372_v26, 0.0  ;;  %v2174_v31 = vmul.f32 %v3218_v55, %v1365_v27  ;;  %v2238_v32 = vmul.f32 %v3218_v55, %v1621_v28 }
 0x1a0   :  { %v1367_v33 = vpop.f32.mrf.mxu0  ;;  %v1623_v34 = vpop.f32.mrf.mxu1 }
 0x1a1   :  { %2564 = vst [vmem:[#allocation8 + $0xf8] sm:$0xff] %v2436_v29  ;;  %2628 = vst [vmem:[#allocation8 + $0x2f8] sm:$0xff] %v2500_v30  ;;  %v2309_v35 = vadd.f32 %v3223_v57, %v2174_v31  ;;  %v2373_v36 = vadd.f32 %v3223_v57, %v2238_v32  ;;  %v3380_v29 = vld [vmem:[%s3499_s2] ss:$0 sm:$0xff]  ;;  %s3148_s2 = smov [#allocation8]  }
 0x1a2   :  { %v1368_v37 = vpop.f32.mrf.mxu0  ;;  %v1624_v38 = vpop.f32.mrf.mxu1 }
 0x1a3   :  { %v2437_v39 = vmax.f32 %v2309_v35, 0.0  ;;  %v2501_v40 = vmax.f32 %v2373_v36, 0.0  ;;  %v2175_v41 = vmul.f32 %v3218_v55, %v1368_v37  ;;  %v2239_v42 = vmul.f32 %v3218_v55, %v1624_v38 }
 0x1a4   :  { %v1370_v43 = vpop.f32.mrf.mxu0  ;;  %v1626_v44 = vpop.f32.mrf.mxu1 }
 0x1a5   :  { %2565 = vst [vmem:[#allocation8 + $0x100] sm:$0xff] %v2437_v39  ;;  %2629 = vst [vmem:[#allocation8 + $0x300] sm:$0xff] %v2501_v40  ;;  %v2310_v45 = vadd.f32 %v3223_v57, %v2175_v41  ;;  %v2374_v46 = vadd.f32 %v3223_v57, %v2239_v42 }
 0x1a6   :  { %v1373_v47 = vpop.f32.mrf.mxu0  ;;  %v1629_v48 = vpop.f32.mrf.mxu1 }
 0x1a7   :  { %v2438_v49 = vmax.f32 %v2310_v45, 0.0  ;;  %v2502_v50 = vmax.f32 %v2374_v46, 0.0  ;;  %v2176_v51 = vmul.f32 %v3218_v55, %v1373_v47  ;;  %v2240_v52 = vmul.f32 %v3218_v55, %v1629_v48 }
 0x1a8   :  { %v1375_v53 = vpop.f32.mrf.mxu0  ;;  %v1631_v54 = vpop.f32.mrf.mxu1 }
 0x1a9   :  { %2566 = vst [vmem:[#allocation8 + $0x108] sm:$0xff] %v2438_v49  ;;  %2630 = vst [vmem:[#allocation8 + $0x308] sm:$0xff] %v2502_v50  ;;  %v2311_v56 = vadd.f32 %v3223_v57, %v2176_v51  ;;  %v2375_v58 = vadd.f32 %v3223_v57, %v2240_v52 }
 0x1aa   :  { %v1376_v59 = vpop.f32.mrf.mxu0  ;;  %v1632_v60 = vpop.f32.mrf.mxu1 }
 0x1ab   :  { %v2439_v61 = vmax.f32 %v2311_v56, 0.0  ;;  %v2503_v62 = vmax.f32 %v2375_v58, 0.0  ;;  %v2177_v63 = vmul.f32 %v3218_v55, %v1376_v59  ;;  %v2241_v0 = vmul.f32 %v3218_v55, %v1632_v60 }
 0x1ac   :  { %v1378_v1 = vpop.f32.mrf.mxu0  ;;  %v1634_v2 = vpop.f32.mrf.mxu1 }
 0x1ad   :  { %2567 = vst [vmem:[#allocation8 + $0x110] sm:$0xff] %v2439_v61  ;;  %2631 = vst [vmem:[#allocation8 + $0x310] sm:$0xff] %v2503_v62  ;;  %v2312_v3 = vadd.f32 %v3223_v57, %v2177_v63  ;;  %v2376_v4 = vadd.f32 %v3223_v57, %v2241_v0 }
 0x1ae   :  { %v1381_v5 = vpop.f32.mrf.mxu0  ;;  %v1637_v6 = vpop.f32.mrf.mxu1 }
 0x1af   :  { %v2440_v7 = vmax.f32 %v2312_v3, 0.0  ;;  %v2504_v8 = vmax.f32 %v2376_v4, 0.0  ;;  %v2178_v9 = vmul.f32 %v3218_v55, %v1381_v5  ;;  %v2242_v10 = vmul.f32 %v3218_v55, %v1637_v6 }
 0x1b0   :  { %v1383_v11 = vpop.f32.mrf.mxu0  ;;  %v1639_v12 = vpop.f32.mrf.mxu1 }
 0x1b1   :  { %2568 = vst [vmem:[#allocation8 + $0x118] sm:$0xff] %v2440_v7  ;;  %2632 = vst [vmem:[#allocation8 + $0x318] sm:$0xff] %v2504_v8  ;;  %v2313_v13 = vadd.f32 %v3223_v57, %v2178_v9  ;;  %v2377_v14 = vadd.f32 %v3223_v57, %v2242_v10 }
 0x1b2   :  { %v1384_v15 = vpop.f32.mrf.mxu0  ;;  %v1640_v16 = vpop.f32.mrf.mxu1 }
 0x1b3   :  { %v2441_v17 = vmax.f32 %v2313_v13, 0.0  ;;  %v2505_v18 = vmax.f32 %v2377_v14, 0.0  ;;  %v2179_v19 = vmul.f32 %v3218_v55, %v1384_v15  ;;  %v2243_v20 = vmul.f32 %v3218_v55, %v1640_v16 }
 0x1b4   :  { %v1386_v21 = vpop.f32.mrf.mxu0  ;;  %v1642_v22 = vpop.f32.mrf.mxu1 }
 0x1b5   :  { %2569 = vst [vmem:[#allocation8 + $0x120] sm:$0xff] %v2441_v17  ;;  %2633 = vst [vmem:[#allocation8 + $0x320] sm:$0xff] %v2505_v18  ;;  %v2314_v23 = vadd.f32 %v3223_v57, %v2179_v19  ;;  %v2378_v24 = vadd.f32 %v3223_v57, %v2243_v20  ;;  %v3387_v57 = vld [vmem:[%s3500_s3] ss:$0 sm:$0xff]  ;;  %s2666_s3 = sshll.u32 %s3148_s2, 4  ;;  %s2667_s3 = int_to_ptr.vmem [resolvable:$true] %s2666_s3 }
 0x1b6   :  { %v1389_v25 = vpop.f32.mrf.mxu0  ;;  %v1645_v26 = vpop.f32.mrf.mxu1  ;;  %s3115_s9 = scalar_lea.vmem %s2667_s3, 16384  ;;  %p3120_p11 = scmp.lt.s32.totalorder %s2667_s3, %s2667_s3 }
 0x1b7   :  { %v2442_v27 = vmax.f32 %v2314_v23, 0.0  ;;  %v2506_v28 = vmax.f32 %v2378_v24, 0.0  ;;  %v2180_v30 = vmul.f32 %v3380_v29, %v1389_v25  ;;  %v2244_v55 = vmul.f32 %v3380_v29, %v1645_v26  ;;  %p3116_p10 = scmp.ne.s32.totalorder %s2667_s3, %s3115_s9  ;;  %p3121_p12 = scmp.lt.s32.totalorder %s3115_s9, %s3115_s9 }
 0x1b8   :  { %v1391_v31 = vpop.f32.mrf.mxu0  ;;  %v1647_v32 = vpop.f32.mrf.mxu1 }
 0x1b9   :  { %2570 = vst [vmem:[#allocation8 + $0x128] sm:$0xff] %v2442_v27  ;;  %2634 = vst [vmem:[#allocation8 + $0x328] sm:$0xff] %v2506_v28  ;;  %v2315_v33 = vadd.f32 %v3387_v57, %v2180_v30  ;;  %v2379_v34 = vadd.f32 %v3387_v57, %v2244_v55  ;;  %p3122_p13 = por %p3121_p12, %p3120_p11 }
 0x1ba   :  { %v1392_v35 = vpop.f32.mrf.mxu0  ;;  %v1648_v36 = vpop.f32.mrf.mxu1 }
 0x1bb   :  { %v2443_v37 = vmax.f32 %v2315_v33, 0.0  ;;  %v2507_v38 = vmax.f32 %v2379_v34, 0.0  ;;  %v2181_v39 = vmul.f32 %v3380_v29, %v1392_v35  ;;  %v2245_v40 = vmul.f32 %v3380_v29, %v1648_v36  ;;  %p3123_p0 = pnand %p3122_p13, %p3116_p10 }
 0x1bc   :  { %v1394_v41 = vpop.f32.mrf.mxu0  ;;  %v1650_v42 = vpop.f32.mrf.mxu1 }
 0x1bd   :  { %2571 = vst [vmem:[#allocation8 + $0x130] sm:$0xff] %v2443_v37  ;;  %2635 = vst [vmem:[#allocation8 + $0x330] sm:$0xff] %v2507_v38  ;;  %v2316_v43 = vadd.f32 %v3387_v57, %v2181_v39  ;;  %v2380_v44 = vadd.f32 %v3387_v57, %v2245_v40 }
 0x1be   :  { %v1397_v45 = vpop.f32.mrf.mxu0  ;;  %v1653_v46 = vpop.f32.mrf.mxu1 }
 0x1bf   :  { %v2444_v47 = vmax.f32 %v2316_v43, 0.0  ;;  %v2508_v48 = vmax.f32 %v2380_v44, 0.0  ;;  %v2182_v49 = vmul.f32 %v3380_v29, %v1397_v45  ;;  %v2246_v50 = vmul.f32 %v3380_v29, %v1653_v46 }
 0x1c0   :  { %v1399_v51 = vpop.f32.mrf.mxu0  ;;  %v1655_v52 = vpop.f32.mrf.mxu1 }
 0x1c1   :  { %2572 = vst [vmem:[#allocation8 + $0x138] sm:$0xff] %v2444_v47  ;;  %2636 = vst [vmem:[#allocation8 + $0x338] sm:$0xff] %v2508_v48  ;;  %v2317_v53 = vadd.f32 %v3387_v57, %v2182_v49  ;;  %v2381_v54 = vadd.f32 %v3387_v57, %v2246_v50 }
 0x1c2   :  { %v1400_v56 = vpop.f32.mrf.mxu0  ;;  %v1656_v58 = vpop.f32.mrf.mxu1 }
 0x1c3   :  { %v2445_v59 = vmax.f32 %v2317_v53, 0.0  ;;  %v2509_v60 = vmax.f32 %v2381_v54, 0.0  ;;  %v2183_v61 = vmul.f32 %v3380_v29, %v1400_v56  ;;  %v2247_v62 = vmul.f32 %v3380_v29, %v1656_v58 }
 0x1c4   :  { %v1402_v63 = vpop.f32.mrf.mxu0  ;;  %v1658_v0 = vpop.f32.mrf.mxu1 }
 0x1c5   :  { %2573 = vst [vmem:[#allocation8 + $0x140] sm:$0xff] %v2445_v59  ;;  %2637 = vst [vmem:[#allocation8 + $0x340] sm:$0xff] %v2509_v60  ;;  %v2318_v1 = vadd.f32 %v3387_v57, %v2183_v61  ;;  %v2382_v2 = vadd.f32 %v3387_v57, %v2247_v62 }
 0x1c6   :  { %v1405_v3 = vpop.f32.mrf.mxu0  ;;  %v1661_v4 = vpop.f32.mrf.mxu1 }
 0x1c7   :  { %v2446_v5 = vmax.f32 %v2318_v1, 0.0  ;;  %v2510_v6 = vmax.f32 %v2382_v2, 0.0  ;;  %v2184_v7 = vmul.f32 %v3380_v29, %v1405_v3  ;;  %v2248_v8 = vmul.f32 %v3380_v29, %v1661_v4 }
 0x1c8   :  { %v1407_v9 = vpop.f32.mrf.mxu0  ;;  %v1663_v10 = vpop.f32.mrf.mxu1 }
 0x1c9   :  { %2574 = vst [vmem:[#allocation8 + $0x148] sm:$0xff] %v2446_v5  ;;  %2638 = vst [vmem:[#allocation8 + $0x348] sm:$0xff] %v2510_v6  ;;  %v2319_v11 = vadd.f32 %v3387_v57, %v2184_v7  ;;  %v2383_v12 = vadd.f32 %v3387_v57, %v2248_v8 }
 0x1ca   :  { %v1408_v13 = vpop.f32.mrf.mxu0  ;;  %v1664_v14 = vpop.f32.mrf.mxu1 }
 0x1cb   :  { %v2447_v15 = vmax.f32 %v2319_v11, 0.0  ;;  %v2511_v16 = vmax.f32 %v2383_v12, 0.0  ;;  %v2185_v17 = vmul.f32 %v3380_v29, %v1408_v13  ;;  %v2249_v18 = vmul.f32 %v3380_v29, %v1664_v14 }
 0x1cc   :  { %v1410_v19 = vpop.f32.mrf.mxu0  ;;  %v1666_v20 = vpop.f32.mrf.mxu1 }
 0x1cd   :  { %2575 = vst [vmem:[#allocation8 + $0x150] sm:$0xff] %v2447_v15  ;;  %2639 = vst [vmem:[#allocation8 + $0x350] sm:$0xff] %v2511_v16  ;;  %v2320_v21 = vadd.f32 %v3387_v57, %v2185_v17  ;;  %v2384_v22 = vadd.f32 %v3387_v57, %v2249_v18 }
 0x1ce   :  { %v1413_v23 = vpop.f32.mrf.mxu0  ;;  %v1669_v24 = vpop.f32.mrf.mxu1 }
 0x1cf   :  { %v2448_v25 = vmax.f32 %v2320_v21, 0.0  ;;  %v2512_v26 = vmax.f32 %v2384_v22, 0.0  ;;  %v2186_v27 = vmul.f32 %v3380_v29, %v1413_v23  ;;  %v2250_v28 = vmul.f32 %v3380_v29, %v1669_v24 }
 0x1d0   :  { %v1415_v30 = vpop.f32.mrf.mxu0  ;;  %v1671_v55 = vpop.f32.mrf.mxu1 }
 0x1d1   :  { %2576 = vst [vmem:[#allocation8 + $0x158] sm:$0xff] %v2448_v25  ;;  %2640 = vst [vmem:[#allocation8 + $0x358] sm:$0xff] %v2512_v26  ;;  %v2321_v31 = vadd.f32 %v3387_v57, %v2186_v27  ;;  %v2385_v32 = vadd.f32 %v3387_v57, %v2250_v28 }
 0x1d2   :  { %v1416_v33 = vpop.f32.mrf.mxu0  ;;  %v1672_v34 = vpop.f32.mrf.mxu1 }
 0x1d3   :  { %v2449_v35 = vmax.f32 %v2321_v31, 0.0  ;;  %v2513_v36 = vmax.f32 %v2385_v32, 0.0  ;;  %v2187_v37 = vmul.f32 %v3380_v29, %v1416_v33  ;;  %v2251_v38 = vmul.f32 %v3380_v29, %v1672_v34 }
 0x1d4   :  { %v1418_v39 = vpop.f32.mrf.mxu0  ;;  %v1674_v40 = vpop.f32.mrf.mxu1 }
 0x1d5   :  { %2577 = vst [vmem:[#allocation8 + $0x160] sm:$0xff] %v2449_v35  ;;  %2641 = vst [vmem:[#allocation8 + $0x360] sm:$0xff] %v2513_v36  ;;  %v2322_v41 = vadd.f32 %v3387_v57, %v2187_v37  ;;  %v2386_v42 = vadd.f32 %v3387_v57, %v2251_v38 }
 0x1d6   :  { %v1421_v43 = vpop.f32.mrf.mxu0  ;;  %v1677_v44 = vpop.f32.mrf.mxu1 }
 0x1d7   :  { %v2450_v45 = vmax.f32 %v2322_v41, 0.0  ;;  %v2514_v46 = vmax.f32 %v2386_v42, 0.0  ;;  %v2188_v47 = vmul.f32 %v3380_v29, %v1421_v43  ;;  %v2252_v48 = vmul.f32 %v3380_v29, %v1677_v44 }
 0x1d8   :  { %v1423_v49 = vpop.f32.mrf.mxu0  ;;  %v1679_v50 = vpop.f32.mrf.mxu1 }
 0x1d9   :  { %2578 = vst [vmem:[#allocation8 + $0x168] sm:$0xff] %v2450_v45  ;;  %2642 = vst [vmem:[#allocation8 + $0x368] sm:$0xff] %v2514_v46  ;;  %v2323_v51 = vadd.f32 %v3387_v57, %v2188_v47  ;;  %v2387_v52 = vadd.f32 %v3387_v57, %v2252_v48 }
 0x1da   :  { %v1424_v53 = vpop.f32.mrf.mxu0  ;;  %v1680_v54 = vpop.f32.mrf.mxu1 }
 0x1db   :  { %v2451_v56 = vmax.f32 %v2323_v51, 0.0  ;;  %v2515_v58 = vmax.f32 %v2387_v52, 0.0  ;;  %v2189_v59 = vmul.f32 %v3380_v29, %v1424_v53  ;;  %v2253_v60 = vmul.f32 %v3380_v29, %v1680_v54 }
 0x1dc   :  { %v1426_v61 = vpop.f32.mrf.mxu0  ;;  %v1682_v62 = vpop.f32.mrf.mxu1 }
 0x1dd   :  { %2579 = vst [vmem:[#allocation8 + $0x170] sm:$0xff] %v2451_v56  ;;  %2643 = vst [vmem:[#allocation8 + $0x370] sm:$0xff] %v2515_v58  ;;  %v2324_v63 = vadd.f32 %v3387_v57, %v2189_v59  ;;  %v2388_v0 = vadd.f32 %v3387_v57, %v2253_v60 }
 0x1de   :  { %v1429_v1 = vpop.f32.mrf.mxu0  ;;  %v1685_v2 = vpop.f32.mrf.mxu1 }
 0x1df   :  { %v2452_v3 = vmax.f32 %v2324_v63, 0.0  ;;  %v2516_v4 = vmax.f32 %v2388_v0, 0.0  ;;  %v2190_v5 = vmul.f32 %v3380_v29, %v1429_v1  ;;  %v2254_v6 = vmul.f32 %v3380_v29, %v1685_v2 }
 0x1e0   :  { %v1431_v7 = vpop.f32.mrf.mxu0  ;;  %v1687_v8 = vpop.f32.mrf.mxu1 }
 0x1e1   :  { %2580 = vst [vmem:[#allocation8 + $0x178] sm:$0xff] %v2452_v3  ;;  %2644 = vst [vmem:[#allocation8 + $0x378] sm:$0xff] %v2516_v4  ;;  %v2325_v9 = vadd.f32 %v3387_v57, %v2190_v5  ;;  %v2389_v10 = vadd.f32 %v3387_v57, %v2254_v6 }
 0x1e2   :  { %v1432_v11 = vpop.f32.mrf.mxu0  ;;  %v1688_v12 = vpop.f32.mrf.mxu1 }
 0x1e3   :  { %v2453_v13 = vmax.f32 %v2325_v9, 0.0  ;;  %v2517_v14 = vmax.f32 %v2389_v10, 0.0  ;;  %v2191_v15 = vmul.f32 %v3380_v29, %v1432_v11  ;;  %v2255_v16 = vmul.f32 %v3380_v29, %v1688_v12 }
 0x1e4   :  { %v1434_v17 = vpop.f32.mrf.mxu0  ;;  %v1690_v18 = vpop.f32.mrf.mxu1 }
 0x1e5   :  { %2581 = vst [vmem:[#allocation8 + $0x180] sm:$0xff] %v2453_v13  ;;  %2645 = vst [vmem:[#allocation8 + $0x380] sm:$0xff] %v2517_v14  ;;  %v2326_v19 = vadd.f32 %v3387_v57, %v2191_v15  ;;  %v2390_v20 = vadd.f32 %v3387_v57, %v2255_v16 }
 0x1e6   :  { %v1437_v21 = vpop.f32.mrf.mxu0  ;;  %v1693_v22 = vpop.f32.mrf.mxu1 }
 0x1e7   :  { %v2454_v23 = vmax.f32 %v2326_v19, 0.0  ;;  %v2518_v24 = vmax.f32 %v2390_v20, 0.0  ;;  %v2192_v25 = vmul.f32 %v3380_v29, %v1437_v21  ;;  %v2256_v26 = vmul.f32 %v3380_v29, %v1693_v22 }
 0x1e8   :  { %v1439_v27 = vpop.f32.mrf.mxu0  ;;  %v1695_v28 = vpop.f32.mrf.mxu1 }
 0x1e9   :  { %2582 = vst [vmem:[#allocation8 + $0x188] sm:$0xff] %v2454_v23  ;;  %2646 = vst [vmem:[#allocation8 + $0x388] sm:$0xff] %v2518_v24  ;;  %v2327_v30 = vadd.f32 %v3387_v57, %v2192_v25  ;;  %v2391_v55 = vadd.f32 %v3387_v57, %v2256_v26 }
 0x1ea   :  { %v1440_v31 = vpop.f32.mrf.mxu0  ;;  %v1696_v32 = vpop.f32.mrf.mxu1 }
 0x1eb   :  { %v2455_v33 = vmax.f32 %v2327_v30, 0.0  ;;  %v2519_v34 = vmax.f32 %v2391_v55, 0.0  ;;  %v2193_v35 = vmul.f32 %v3380_v29, %v1440_v31  ;;  %v2257_v36 = vmul.f32 %v3380_v29, %v1696_v32 }
 0x1ec   :  { %v1442_v37 = vpop.f32.mrf.mxu0  ;;  %v1698_v38 = vpop.f32.mrf.mxu1 }
 0x1ed   :  { %2583 = vst [vmem:[#allocation8 + $0x190] sm:$0xff] %v2455_v33  ;;  %2647 = vst [vmem:[#allocation8 + $0x390] sm:$0xff] %v2519_v34  ;;  %v2328_v39 = vadd.f32 %v3387_v57, %v2193_v35  ;;  %v2392_v40 = vadd.f32 %v3387_v57, %v2257_v36 }
 0x1ee   :  { %v1445_v41 = vpop.f32.mrf.mxu0  ;;  %v1701_v42 = vpop.f32.mrf.mxu1 }
 0x1ef   :  { %v2456_v43 = vmax.f32 %v2328_v39, 0.0  ;;  %v2520_v44 = vmax.f32 %v2392_v40, 0.0  ;;  %v2194_v45 = vmul.f32 %v3380_v29, %v1445_v41  ;;  %v2258_v46 = vmul.f32 %v3380_v29, %v1701_v42 }
 0x1f0   :  { %v1447_v47 = vpop.f32.mrf.mxu0  ;;  %v1703_v48 = vpop.f32.mrf.mxu1 }
 0x1f1   :  { %2584 = vst [vmem:[#allocation8 + $0x198] sm:$0xff] %v2456_v43  ;;  %2648 = vst [vmem:[#allocation8 + $0x398] sm:$0xff] %v2520_v44  ;;  %v2329_v49 = vadd.f32 %v3387_v57, %v2194_v45  ;;  %v2393_v50 = vadd.f32 %v3387_v57, %v2258_v46 }
 0x1f2   :  { %v1448_v51 = vpop.f32.mrf.mxu0  ;;  %v1704_v52 = vpop.f32.mrf.mxu1 }
 0x1f3   :  { %v2457_v53 = vmax.f32 %v2329_v49, 0.0  ;;  %v2521_v54 = vmax.f32 %v2393_v50, 0.0  ;;  %v2195_v56 = vmul.f32 %v3380_v29, %v1448_v51  ;;  %v2259_v58 = vmul.f32 %v3380_v29, %v1704_v52 }
 0x1f4   :  { %v1450_v59 = vpop.f32.mrf.mxu0  ;;  %v1706_v60 = vpop.f32.mrf.mxu1 }
 0x1f5   :  { %2585 = vst [vmem:[#allocation8 + $0x1a0] sm:$0xff] %v2457_v53  ;;  %2649 = vst [vmem:[#allocation8 + $0x3a0] sm:$0xff] %v2521_v54  ;;  %v2330_v61 = vadd.f32 %v3387_v57, %v2195_v56  ;;  %v2394_v62 = vadd.f32 %v3387_v57, %v2259_v58 }
 0x1f6   :  { %v1453_v63 = vpop.f32.mrf.mxu0  ;;  %v1709_v0 = vpop.f32.mrf.mxu1 }
 0x1f7   :  { %v2458_v1 = vmax.f32 %v2330_v61, 0.0  ;;  %v2522_v2 = vmax.f32 %v2394_v62, 0.0  ;;  %v2196_v3 = vmul.f32 %v3380_v29, %v1453_v63  ;;  %v2260_v4 = vmul.f32 %v3380_v29, %v1709_v0 }
 0x1f8   :  { %v1455_v5 = vpop.f32.mrf.mxu0  ;;  %v1711_v6 = vpop.f32.mrf.mxu1 }
 0x1f9   :  { %2586 = vst [vmem:[#allocation8 + $0x1a8] sm:$0xff] %v2458_v1  ;;  %2650 = vst [vmem:[#allocation8 + $0x3a8] sm:$0xff] %v2522_v2  ;;  %v2331_v7 = vadd.f32 %v3387_v57, %v2196_v3  ;;  %v2395_v8 = vadd.f32 %v3387_v57, %v2260_v4 }
 0x1fa   :  { %v1456_v9 = vpop.f32.mrf.mxu0  ;;  %v1712_v10 = vpop.f32.mrf.mxu1 }
 0x1fb   :  { %v2459_v11 = vmax.f32 %v2331_v7, 0.0  ;;  %v2523_v12 = vmax.f32 %v2395_v8, 0.0  ;;  %v2197_v13 = vmul.f32 %v3380_v29, %v1456_v9  ;;  %v2261_v14 = vmul.f32 %v3380_v29, %v1712_v10 }
 0x1fc   :  { %v1458_v15 = vpop.f32.mrf.mxu0  ;;  %v1714_v16 = vpop.f32.mrf.mxu1 }
 0x1fd   :  { %2587 = vst [vmem:[#allocation8 + $0x1b0] sm:$0xff] %v2459_v11  ;;  %2651 = vst [vmem:[#allocation8 + $0x3b0] sm:$0xff] %v2523_v12  ;;  %v2332_v17 = vadd.f32 %v3387_v57, %v2197_v13  ;;  %v2396_v18 = vadd.f32 %v3387_v57, %v2261_v14 }
 0x1fe   :  { %v1461_v19 = vpop.f32.mrf.mxu0  ;;  %v1717_v20 = vpop.f32.mrf.mxu1 }
 0x1ff   :  { %v2460_v21 = vmax.f32 %v2332_v17, 0.0  ;;  %v2524_v22 = vmax.f32 %v2396_v18, 0.0  ;;  %v2198_v23 = vmul.f32 %v3380_v29, %v1461_v19  ;;  %v2262_v24 = vmul.f32 %v3380_v29, %v1717_v20 }
 0x200   :  { %v1463_v25 = vpop.f32.mrf.mxu0  ;;  %v1719_v26 = vpop.f32.mrf.mxu1 }
 0x201   :  { %2588 = vst [vmem:[#allocation8 + $0x1b8] sm:$0xff] %v2460_v21  ;;  %2652 = vst [vmem:[#allocation8 + $0x3b8] sm:$0xff] %v2524_v22  ;;  %v2333_v27 = vadd.f32 %v3387_v57, %v2198_v23  ;;  %v2397_v28 = vadd.f32 %v3387_v57, %v2262_v24 }
 0x202   :  { %v1464_v30 = vpop.f32.mrf.mxu0  ;;  %v1720_v55 = vpop.f32.mrf.mxu1 }
 0x203   :  { %v2461_v31 = vmax.f32 %v2333_v27, 0.0  ;;  %v2525_v32 = vmax.f32 %v2397_v28, 0.0  ;;  %v2199_v33 = vmul.f32 %v3380_v29, %v1464_v30  ;;  %v2263_v34 = vmul.f32 %v3380_v29, %v1720_v55 }
 0x204   :  { %v1466_v35 = vpop.f32.mrf.mxu0  ;;  %v1722_v36 = vpop.f32.mrf.mxu1 }
 0x205   :  { %2589 = vst [vmem:[#allocation8 + $0x1c0] sm:$0xff] %v2461_v31  ;;  %2653 = vst [vmem:[#allocation8 + $0x3c0] sm:$0xff] %v2525_v32  ;;  %v2334_v37 = vadd.f32 %v3387_v57, %v2199_v33  ;;  %v2398_v38 = vadd.f32 %v3387_v57, %v2263_v34 }
 0x206   :  { %v1469_v39 = vpop.f32.mrf.mxu0  ;;  %v1725_v40 = vpop.f32.mrf.mxu1 }
 0x207   :  { %v2462_v41 = vmax.f32 %v2334_v37, 0.0  ;;  %v2526_v42 = vmax.f32 %v2398_v38, 0.0  ;;  %v2200_v43 = vmul.f32 %v3380_v29, %v1469_v39  ;;  %v2264_v44 = vmul.f32 %v3380_v29, %v1725_v40 }
 0x208   :  { %v1471_v45 = vpop.f32.mrf.mxu0  ;;  %v1727_v46 = vpop.f32.mrf.mxu1 }
 0x209   :  { %2590 = vst [vmem:[#allocation8 + $0x1c8] sm:$0xff] %v2462_v41  ;;  %2654 = vst [vmem:[#allocation8 + $0x3c8] sm:$0xff] %v2526_v42  ;;  %v2335_v47 = vadd.f32 %v3387_v57, %v2200_v43  ;;  %v2399_v48 = vadd.f32 %v3387_v57, %v2264_v44 }
 0x20a   :  { %v1472_v49 = vpop.f32.mrf.mxu0  ;;  %v1728_v50 = vpop.f32.mrf.mxu1 }
 0x20b   :  { %v2463_v51 = vmax.f32 %v2335_v47, 0.0  ;;  %v2527_v52 = vmax.f32 %v2399_v48, 0.0  ;;  %v2201_v53 = vmul.f32 %v3380_v29, %v1472_v49  ;;  %v2265_v54 = vmul.f32 %v3380_v29, %v1728_v50 }
 0x20c   :  { %v1474_v56 = vpop.f32.mrf.mxu0  ;;  %v1730_v58 = vpop.f32.mrf.mxu1 }
 0x20d   :  { %2591 = vst [vmem:[#allocation8 + $0x1d0] sm:$0xff] %v2463_v51  ;;  %2655 = vst [vmem:[#allocation8 + $0x3d0] sm:$0xff] %v2527_v52  ;;  %v2336_v59 = vadd.f32 %v3387_v57, %v2201_v53  ;;  %v2400_v60 = vadd.f32 %v3387_v57, %v2265_v54 }
 0x20e   :  { %v1477_v61 = vpop.f32.mrf.mxu0  ;;  %v1733_v62 = vpop.f32.mrf.mxu1 }
 0x20f   :  { %v2464_v63 = vmax.f32 %v2336_v59, 0.0  ;;  %v2528_v0 = vmax.f32 %v2400_v60, 0.0  ;;  %v2202_v1 = vmul.f32 %v3380_v29, %v1477_v61  ;;  %v2266_v2 = vmul.f32 %v3380_v29, %v1733_v62 }
 0x210   :  { %v1479_v3 = vpop.f32.mrf.mxu0  ;;  %v1735_v4 = vpop.f32.mrf.mxu1 }
 0x211   :  { %2592 = vst [vmem:[#allocation8 + $0x1d8] sm:$0xff] %v2464_v63  ;;  %2656 = vst [vmem:[#allocation8 + $0x3d8] sm:$0xff] %v2528_v0  ;;  %v2337_v5 = vadd.f32 %v3387_v57, %v2202_v1  ;;  %v2401_v6 = vadd.f32 %v3387_v57, %v2266_v2 }
 0x212   :  { %v1480_v7 = vpop.f32.mrf.mxu0  ;;  %v1736_v8 = vpop.f32.mrf.mxu1 }
 0x213   :  { %v2465_v9 = vmax.f32 %v2337_v5, 0.0  ;;  %v2529_v10 = vmax.f32 %v2401_v6, 0.0  ;;  %v2203_v11 = vmul.f32 %v3380_v29, %v1480_v7  ;;  %v2267_v12 = vmul.f32 %v3380_v29, %v1736_v8 }
 0x214   :  { %v1482_v13 = vpop.f32.mrf.mxu0  ;;  %v1738_v14 = vpop.f32.mrf.mxu1 }
 0x215   :  { %2593 = vst [vmem:[#allocation8 + $0x1e0] sm:$0xff] %v2465_v9  ;;  %2657 = vst [vmem:[#allocation8 + $0x3e0] sm:$0xff] %v2529_v10  ;;  %v2338_v15 = vadd.f32 %v3387_v57, %v2203_v11  ;;  %v2402_v16 = vadd.f32 %v3387_v57, %v2267_v12 }
 0x216   :  { %v1485_v17 = vpop.f32.mrf.mxu0  ;;  %v1741_v18 = vpop.f32.mrf.mxu1 }
 0x217   :  { %v2466_v19 = vmax.f32 %v2338_v15, 0.0  ;;  %v2530_v20 = vmax.f32 %v2402_v16, 0.0  ;;  %v2204_v21 = vmul.f32 %v3380_v29, %v1485_v17  ;;  %v2268_v22 = vmul.f32 %v3380_v29, %v1741_v18 }
 0x218   :  { %v1487_v23 = vpop.f32.mrf.mxu0  ;;  %v1743_v24 = vpop.f32.mrf.mxu1 }
 0x219   :  { %2594 = vst [vmem:[#allocation8 + $0x1e8] sm:$0xff] %v2466_v19  ;;  %2658 = vst [vmem:[#allocation8 + $0x3e8] sm:$0xff] %v2530_v20  ;;  %v2339_v25 = vadd.f32 %v3387_v57, %v2204_v21  ;;  %v2403_v26 = vadd.f32 %v3387_v57, %v2268_v22 }
 0x21a   :  { %v1488_v27 = vpop.f32.mrf.mxu0  ;;  %v1744_v28 = vpop.f32.mrf.mxu1 }
 0x21b   :  { %v2467_v30 = vmax.f32 %v2339_v25, 0.0  ;;  %v2531_v55 = vmax.f32 %v2403_v26, 0.0  ;;  %v2205_v31 = vmul.f32 %v3380_v29, %v1488_v27  ;;  %v2269_v32 = vmul.f32 %v3380_v29, %v1744_v28 }
 0x21c   :  { %v1490_v33 = vpop.f32.mrf.mxu0  ;;  %v1746_v34 = vpop.f32.mrf.mxu1 }
 0x21d   :  { %2595 = vst [vmem:[#allocation8 + $0x1f0] sm:$0xff] %v2467_v30  ;;  %2659 = vst [vmem:[#allocation8 + $0x3f0] sm:$0xff] %v2531_v55  ;;  %v2340_v35 = vadd.f32 %v3387_v57, %v2205_v31  ;;  %v2404_v36 = vadd.f32 %v3387_v57, %v2269_v32 }
 0x21f   :  { %v2468_v37 = vmax.f32 %v2340_v35, 0.0  ;;  %v2532_v38 = vmax.f32 %v2404_v36, 0.0 }
 0x221   :  { %2596 = vst [vmem:[#allocation8 + $0x1f8] sm:$0xff] %v2468_v37  ;;  %2660 = vst [vmem:[#allocation8 + $0x3f8] sm:$0xff] %v2532_v38 }
 0x222   :  { %3126 = shalt.err (!%p3123_p0)
}
 0x223   :  { %2672 = dma.vmem_to_hbm [thread:$0]  %s2667_s3, 16384, %s3501_s4, [#allocation5], %s3142_s18, %s3142_s18, %s3143_s19  }
 0x224   :  { %3139 = dma.done.wait [#allocation5], 16384  }
 0x225   :  { %3140 = vsyncadd [#allocation5], 4294950912 }
 0x226   :  { %2676 = vsyncpa [#allocation4], 1 }
 0x227   :  { %2677 = vsyncpa [#allocation7], 1 }
 0x228   :  { %2678 = vsyncpa [#allocation5], 1 }

</bundles_post_ra>
